<compile_context>
chip_gen: v6e
topology: v6e:2x2x1
jax: 0.10.0
libtpu: 0.0.40
codegen_flags: <defaults>
</compile_context>

<pallas_src>
import functools

import jax
import jax.numpy as jnp
from jax.experimental import pallas as pl
from jax.experimental.pallas import tpu as pltpu

_TAPS = ((0, 0), (0, 1), (1, 0), (1, 1))


# ---------------------------------------------------------------------------
# Fused forward kernel: one grid step == one batch element
# ---------------------------------------------------------------------------
def _fused_kernel(x_ref, hx_ref, cx_ref, opt_ref,
                  w1_ref, b1_ref, w2_ref, b2_ref, w3_ref, b3_ref,
                  wih_ref, whh_ref, blstm_ref, wlh_ref, wlo_ref, blin_ref,
                  q_ref, hy_ref, cy_ref,
                  *, H, W, C0, C1, C2, C3, hidden):
    Ho1, Wo1 = H - 1, W - 1
    Hp, Wp = Ho1 // 2, Wo1 // 2
    Ho2, Wo2 = Hp - 1, Wp - 1
    Ho3, Wo3 = Ho2 - 1, Wo2 - 1

    mxu_dt = w1_ref.dtype  # bf16 on v6e/v7x if packed that way, else f32

    def conv2x2(inp, w_ref_c, b_ref_c, Ho, Wo, Cin):
        """Valid 2x2 conv + ReLU on an NHWC-packed 2-D activation (Hin, Win*Cin).

        w_ref_c holds, per tap (di, dj), a block-diagonal (Wo*Cin, Wo*Cout) weight so
        every tap is one plain 2-D matmul and the output stays (Ho, Wo*Cout).
        """
        acc = None
        for t, (di, dj) in enumerate(_TAPS):
            a = inp[di:di + Ho, dj * Cin:(dj + Wo) * Cin]          # (Ho, Wo*Cin)
            y = jnp.dot(a.astype(mxu_dt), w_ref_c[t],
                        preferred_element_type=jnp.float32)         # (Ho, Wo*Cout)
            acc = y if acc is None else acc + y
        return jnp.maximum(acc + b_ref_c[...], 0.0)

    x2 = x_ref[0]                                                    # (H, W*C0)

    # conv1 + ReLU -> (Ho1, Wo1*C1)
    y1 = conv2x2(x2, w1_ref, b1_ref, Ho1, Wo1, C0)

    # MaxPool2d((2, 2)), floor mode -> (Hp, Wp*C1); static slices, no reshapes.
    rows = [jnp.maximum(y1[2 * i:2 * i + 1, :], y1[2 * i + 1:2 * i + 2, :])
            for i in range(Hp)]
    rmax = jnp.concatenate(rows, axis=0) if Hp > 1 else rows[0]
    cols = [jnp.maximum(rmax[:, (2 * j) * C1:(2 * j + 1) * C1],
                        rmax[:, (2 * j + 1) * C1:(2 * j + 2) * C1])
            for j in range(Wp)]
    pooled = jnp.concatenate(cols, axis=1) if Wp > 1 else cols[0]

    # conv2 + ReLU -> (Ho2, Wo2*C2);  conv3 + ReLU -> (Ho3, Wo3*C3)
    y2 = conv2x2(pooled, w2_ref, b2_ref, Ho2, Wo2, C1)
    y3 = conv2x2(y2, w3_ref, b3_ref, Ho3, Wo3, C2)

    # LSTM cell.  lstm_wih rows were permuted at pack time so the NHWC-packed rows of
    # y3 contract directly (torch's NCHW flatten is folded into the weights); gate
    # columns were reordered to (i, f, o, g).
    emb_cols = Wo3 * C3
    gates = blstm_ref[...]                                           # (1, 4*hidden) f32
    for h in range(Ho3):
        gates = gates + jnp.dot(
            y3[h:h + 1, :].astype(mxu_dt),
            wih_ref[h * emb_cols:(h + 1) * emb_cols, :],
            preferred_element_type=jnp.float32)
    hx = hx_ref[0]                                                   # (1, hidden)
    cx = cx_ref[0]
    gates = gates + jnp.dot(hx.astype(mxu_dt), whh_ref[...],
                            preferred_element_type=jnp.float32)

    Hh = hidden
    # One wide sigmoid over (i, f, o) lanes + one tanh over g.  (approx=True would put
    # the reciprocal on the EUP on v6e/v7x; kept exact here to match torch numerics.)
    ifo = pl.reciprocal(1.0 + jnp.exp(-gates[:, :3 * Hh]), approx=False)
    g = jnp.tanh(gates[:, 3 * Hh:])
    i_g = ifo[:, :Hh]
    f_g = ifo[:, Hh:2 * Hh]
    o_g = ifo[:, 2 * Hh:3 * Hh]
    cy = f_g * cx + i_g * g
    hy = o_g * jnp.tanh(cy)

    # Linear head on [hy, option]; the concat is folded into two matmuls.
    q = (jnp.dot(hy.astype(mxu_dt), wlh_ref[...], preferred_element_type=jnp.float32)
         + jnp.dot(opt_ref[0].astype(mxu_dt), wlo_ref[...],
                   preferred_element_type=jnp.float32)
         + blin_ref[...])

    q_ref[0] = q.astype(q_ref.dtype)
    hy_ref[0] = hy.astype(hy_ref.dtype)
    cy_ref[0] = cy.astype(cy_ref.dtype)


# ---------------------------------------------------------------------------
# Parameter packing: fold layout transforms into the weights once at init
# ---------------------------------------------------------------------------
def _block_diag_tap(w_tap, Wo):
    """(Cin, Cout) tap weight -> (Wo*Cin, Wo*Cout) block-diagonal matrix."""
    Cin, Cout = w_tap.shape
    eye = jnp.eye(Wo, dtype=w_tap.dtype)
    bd = eye[:, None, :, None] * w_tap[None, :, None, :]
    return bd.reshape(Wo * Cin, Wo * Cout)


def init_params(key, obs_dim, hidden_size, option_dim, action_dim):
    """Reference-layout (PyTorch-like) parameters."""
    n, m = obs_dim
    emb = ((n - 1) // 2 - 2) * ((m - 1) // 2 - 2) * 64
    ks = jax.random.split(key, 11)
    s = 0.1
    params = {
        "conv1_w": jax.random.normal(ks[0], (2, 2, 3, 16), jnp.float32) * s,
        "conv1_b": jax.random.normal(ks[1], (16,), jnp.float32) * s,
        "conv2_w": jax.random.normal(ks[2], (2, 2, 16, 32), jnp.float32) * s,
        "conv2_b": jax.random.normal(ks[3], (32,), jnp.float32) * s,
        "conv3_w": jax.random.normal(ks[4], (2, 2, 32, 64), jnp.float32) * s,
        "conv3_b": jax.random.normal(ks[5], (64,), jnp.float32) * s,
        # rows in torch NCHW-flatten order, gate columns in torch (i, f, g, o) order
        "lstm_wih": jax.random.normal(ks[6], (emb, 4 * hidden_size), jnp.float32) * s,
        "lstm_whh": jax.random.normal(ks[7], (hidden_size, 4 * hidden_size), jnp.float32) * s,
        "lstm_b": jax.random.normal(ks[8], (4 * hidden_size,), jnp.float32) * s,  # b_ih + b_hh
        "lin_w": jax.random.normal(ks[9], (hidden_size + option_dim, action_dim), jnp.float32) * s,
        "lin_b": jax.random.normal(ks[10], (action_dim,), jnp.float32) * s,
    }
    return params, emb


def pack_params(p, obs_dim, hidden_size, matmul_dtype=jnp.float32):
    """Pack reference-layout params into kernel layout.

    matmul_dtype=jnp.bfloat16 halves weight VMEM/DMA and feeds the MXU natively on
    v6e/v7x (accumulation stays f32 in-kernel); keep f32 on v5e / for exactness.
    """
    n, m = obs_dim
    Ho1, Wo1 = n - 1, m - 1
    Hp, Wp = Ho1 // 2, Wo1 // 2
    Ho2, Wo2 = Hp - 1, Wp - 1
    Ho3, Wo3 = Ho2 - 1, Wo2 - 1
    Hh = hidden_size

    def pack_conv(w, b, Wo):
        wbd = jnp.stack([_block_diag_tap(w[di, dj], Wo) for di, dj in _TAPS])
        return wbd.astype(matmul_dtype), jnp.tile(b, Wo)[None, :].astype(jnp.float32)

    w1, b1 = pack_conv(p["conv1_w"], p["conv1_b"], Wo1)
    w2, b2 = pack_conv(p["conv2_w"], p["conv2_b"], Wo2)
    w3, b3 = pack_conv(p["conv3_w"], p["conv3_b"], Wo3)

    def gate_reorder(w):  # columns (i, f, g, o) -> (i, f, o, g)
        return jnp.concatenate(
            [w[..., :2 * Hh], w[..., 3 * Hh:], w[..., 2 * Hh:3 * Hh]], axis=-1)

    # Fold torch's NCHW flatten into lstm_wih rows: (c, h, w) order -> (h, w, c) order.
    wih = p["lstm_wih"].reshape(64, Ho3, Wo3, 4 * Hh)
    wih = jnp.transpose(wih, (1, 2, 0, 3)).reshape(Ho3 * Wo3 * 64, 4 * Hh)
    wih = gate_reorder(wih)
    whh = gate_reorder(p["lstm_whh"])
    blstm = gate_reorder(p["lstm_b"][None, :])

    return {
        "w1": w1, "b1": b1, "w2": w2, "b2": b2, "w3": w3, "b3": b3,
        "wih": wih.astype(matmul_dtype),
        "whh": whh.astype(matmul_dtype),
        "blstm": blstm.astype(jnp.float32),
        "wl_h": p["lin_w"][:Hh].astype(matmul_dtype),
        "wl_o": p["lin_w"][Hh:].astype(matmul_dtype),
        "bl": p["lin_b"][None, :].astype(jnp.float32),
    }


# ---------------------------------------------------------------------------
# IntraQFunction forward (single fused pallas_call)
# ---------------------------------------------------------------------------
def intra_q_forward(kp, x, hx, cx, option):
    """x: (B, H, W, 3) NHWC; hx, cx: (B, hidden); option: (B, option_dim)."""
    # TODO(synk): the PyTorch rank-dependent unsqueeze/squeeze branches (3-D x, 1-D hx)
    # are resolved statically here for the batched case (B >= 1, B > 1).
    B, H, W, C0 = x.shape
    hidden = hx.shape[-1]
    option_dim = option.shape[-1]
    action_dim = kp["bl"].shape[-1]

    Ho1, Wo1 = H - 1, W - 1
    Hp, Wp = Ho1 // 2, Wo1 // 2
    Ho2, Wo2 = Hp - 1, Wp - 1
    Ho3, Wo3 = Ho2 - 1, Wo2 - 1
    C1 = kp["w1"].shape[2] // Wo1
    C2 = kp["w2"].shape[2] // Wo2
    C3 = kp["w3"].shape[2] // Wo3
    del Ho2, Ho3  # derived inside the kernel as well

    x2d = x.reshape(B, H, W * C0)
    hx3 = hx.reshape(B, 1, hidden)
    cx3 = cx.reshape(B, 1, hidden)
    opt3 = option.reshape(B, 1, option_dim)

    def batched(shape_tail):
        nd = len(shape_tail)
        return pl.BlockSpec((1,) + tuple(shape_tail), lambda b: (b,) + (0,) * nd)

    def full(arr):
        nd = arr.ndim
        return pl.BlockSpec(arr.shape, lambda b: (0,) * nd)

    weights = (kp["w1"], kp["b1"], kp["w2"], kp["b2"], kp["w3"], kp["b3"],
               kp["wih"], kp["whh"], kp["blstm"], kp["wl_h"], kp["wl_o"], kp["bl"])

    kernel = functools.partial(
        _fused_kernel, H=H, W=W, C0=C0, C1=C1, C2=C2, C3=C3, hidden=hidden)

    # TODO(synk): if obs_dim scales so lstm_wih no longer fits v7x's 64 MiB VMEM, add a
    # K-axis grid over the embedding with a (1, 4*hidden) f32 VMEM accumulator.
    q3, hy3, cy3 = pl.pallas_call(
        kernel,
        grid=(B,),
        in_specs=[batched((H, W * C0)), batched((1, hidden)),
                  batched((1, hidden)), batched((1, option_dim))]
                 + [full(w) for w in weights],
        out_specs=(batched((1, action_dim)), batched((1, hidden)),
                   batched((1, hidden))),
        out_shape=(jax.ShapeDtypeStruct((B, 1, action_dim), jnp.float32),
                   jax.ShapeDtypeStruct((B, 1, hidden), jnp.float32),
                   jax.ShapeDtypeStruct((B, 1, hidden), jnp.float32)),
        compiler_params=pltpu.CompilerParams(dimension_semantics=("parallel",)),
    )(x2d, hx3, cx3, opt3, *weights)

    q = q3.reshape(B, action_dim)
    hy = hy3.reshape(B, hidden)
    cy = cy3.reshape(B, hidden)
    if q.shape[-1] == 1:  # replicate torch .squeeze(-1)
        q = q[..., 0]
    return q, (hy, cy)


# ---------------------------------------------------------------------------
if __name__ == "__main__":
    key = jax.random.PRNGKey(0)
    obs_dim = (8, 8)        # -> image_embedding_size = ((8-1)//2 - 2)^2 * 64 = 64
    hidden_size = 32
    option_dim = 4
    action_dim = 5
    B = 2

    pkey, xkey, hkey, ckey, okey = jax.random.split(key, 5)
    params, emb_size = init_params(pkey, obs_dim, hidden_size, option_dim, action_dim)
    kparams = pack_params(params, obs_dim, hidden_size, matmul_dtype=jnp.float32)

    x = jax.random.uniform(xkey, (B, obs_dim[0], obs_dim[1], 3), jnp.float32)
    hx = jax.random.normal(hkey, (B, hidden_size), jnp.float32) * 0.1
    cx = jax.random.normal(ckey, (B, hidden_size), jnp.float32) * 0.1
    option = jax.nn.one_hot(
        jax.random.randint(okey, (B,), 0, option_dim), option_dim, dtype=jnp.float32)

    fwd = jax.jit(intra_q_forward)
    q, (hy, cy) = fwd(kparams, x, hx, cx, option)
    jax.block_until_ready((q, hy, cy))

    assert q.shape == (B, action_dim)
    assert hy.shape == (B, hidden_size) and cy.shape == (B, hidden_size)
    assert bool(jnp.all(jnp.isfinite(q)))
    print("KERNEL_OK")
</pallas_src>

<mosaic_0001>
module attributes {stable_mosaic.version = 11 : i64} {
  func.func @_fused_kernel(%arg0: i32, %arg1: memref<1x8x24xf32, #tpu.memory_space<vmem>>, %arg2: memref<1x1x32xf32, #tpu.memory_space<vmem>>, %arg3: memref<1x1x32xf32, #tpu.memory_space<vmem>>, %arg4: memref<1x1x4xf32, #tpu.memory_space<vmem>>, %arg5: memref<4x21x112xf32, #tpu.memory_space<vmem>>, %arg6: memref<1x112xf32, #tpu.memory_space<vmem>>, %arg7: memref<4x32x64xf32, #tpu.memory_space<vmem>>, %arg8: memref<1x64xf32, #tpu.memory_space<vmem>>, %arg9: memref<4x32x64xf32, #tpu.memory_space<vmem>>, %arg10: memref<1x64xf32, #tpu.memory_space<vmem>>, %arg11: memref<64x128xf32, #tpu.memory_space<vmem>>, %arg12: memref<32x128xf32, #tpu.memory_space<vmem>>, %arg13: memref<1x128xf32, #tpu.memory_space<vmem>>, %arg14: memref<32x5xf32, #tpu.memory_space<vmem>>, %arg15: memref<4x5xf32, #tpu.memory_space<vmem>>, %arg16: memref<1x5xf32, #tpu.memory_space<vmem>>, %arg17: memref<1x1x5xf32, #tpu.memory_space<vmem>>, %arg18: memref<1x1x32xf32, #tpu.memory_space<vmem>>, %arg19: memref<1x1x32xf32, #tpu.memory_space<vmem>>) attributes {dimension_semantics = [#tpu.dimension_semantics<parallel>], iteration_bounds = array<i64: 2>, scalar_prefetch = 0 : i64, scratch_operands = 0 : i64, tpu.core_type = #tpu.core_type<tc>, window_params = [{transform_indices = @transform_0, window_bounds = array<i64: 1, 8, 24>}, {transform_indices = @transform_1, window_bounds = array<i64: 1, 1, 32>}, {transform_indices = @transform_2, window_bounds = array<i64: 1, 1, 32>}, {transform_indices = @transform_3, window_bounds = array<i64: 1, 1, 4>}, {pipeline_mode = #tpu.pipeline_mode<synchronous>, transform_indices = @transform_4, window_bounds = array<i64: 4, 21, 112>}, {pipeline_mode = #tpu.pipeline_mode<synchronous>, transform_indices = @transform_5, window_bounds = array<i64: 1, 112>}, {pipeline_mode = #tpu.pipeline_mode<synchronous>, transform_indices = @transform_6, window_bounds = array<i64: 4, 32, 64>}, {pipeline_mode = #tpu.pipeline_mode<synchronous>, transform_indices = @transform_7, window_bounds = array<i64: 1, 64>}, {pipeline_mode = #tpu.pipeline_mode<synchronous>, transform_indices = @transform_8, window_bounds = array<i64: 4, 32, 64>}, {pipeline_mode = #tpu.pipeline_mode<synchronous>, transform_indices = @transform_9, window_bounds = array<i64: 1, 64>}, {pipeline_mode = #tpu.pipeline_mode<synchronous>, transform_indices = @transform_10, window_bounds = array<i64: 64, 128>}, {pipeline_mode = #tpu.pipeline_mode<synchronous>, transform_indices = @transform_11, window_bounds = array<i64: 32, 128>}, {pipeline_mode = #tpu.pipeline_mode<synchronous>, transform_indices = @transform_12, window_bounds = array<i64: 1, 128>}, {pipeline_mode = #tpu.pipeline_mode<synchronous>, transform_indices = @transform_13, window_bounds = array<i64: 32, 5>}, {pipeline_mode = #tpu.pipeline_mode<synchronous>, transform_indices = @transform_14, window_bounds = array<i64: 4, 5>}, {pipeline_mode = #tpu.pipeline_mode<synchronous>, transform_indices = @transform_15, window_bounds = array<i64: 1, 5>}, {transform_indices = @transform_16, window_bounds = array<i64: 1, 1, 5>}, {transform_indices = @transform_17, window_bounds = array<i64: 1, 1, 32>}, {transform_indices = @transform_18, window_bounds = array<i64: 1, 1, 32>}]} {
    %c0 = arith.constant 0 : index
    %c0_0 = arith.constant 0 : index
    %c0_1 = arith.constant 0 : index
    %0 = vector.load %arg1[%c0, %c0_0, %c0_1] : memref<1x8x24xf32, #tpu.memory_space<vmem>>, vector<1x8x24xf32>
    %1 = vector.shape_cast %0 : vector<1x8x24xf32> to vector<8x24xf32>
    %2 = vector.extract_strided_slice %1 {offsets = [0, 0], sizes = [7, 21], strides = [1, 1]} : vector<8x24xf32> to vector<7x21xf32>
    %c0_2 = arith.constant 0 : index
    %c0_3 = arith.constant 0 : index
    %c0_4 = arith.constant 0 : index
    %3 = vector.load %arg5[%c0_2, %c0_3, %c0_4] : memref<4x21x112xf32, #tpu.memory_space<vmem>>, vector<1x21x112xf32>
    %4 = vector.shape_cast %3 : vector<1x21x112xf32> to vector<21x112xf32>
    %cst = arith.constant dense<0.000000e+00> : vector<7x112xf32>
    %5 = tpu.matmul %2, %4, %cst {dimension_numbers = #tpu.dot_dimension_numbers<[1], [0], [0], [1], [0, 0, 1, 1], [], []>} : vector<7x21xf32>, vector<21x112xf32>, vector<7x112xf32> -> vector<7x112xf32>
    %6 = vector.extract_strided_slice %1 {offsets = [0, 3], sizes = [7, 21], strides = [1, 1]} : vector<8x24xf32> to vector<7x21xf32>
    %c1 = arith.constant 1 : index
    %c0_5 = arith.constant 0 : index
    %c0_6 = arith.constant 0 : index
    %7 = vector.load %arg5[%c1, %c0_5, %c0_6] : memref<4x21x112xf32, #tpu.memory_space<vmem>>, vector<1x21x112xf32>
    %8 = vector.shape_cast %7 : vector<1x21x112xf32> to vector<21x112xf32>
    %cst_7 = arith.constant dense<0.000000e+00> : vector<7x112xf32>
    %9 = tpu.matmul %6, %8, %cst_7 {dimension_numbers = #tpu.dot_dimension_numbers<[1], [0], [0], [1], [0, 0, 1, 1], [], []>} : vector<7x21xf32>, vector<21x112xf32>, vector<7x112xf32> -> vector<7x112xf32>
    %10 = arith.addf %5, %9 : vector<7x112xf32>
    %11 = vector.extract_strided_slice %1 {offsets = [1, 0], sizes = [7, 21], strides = [1, 1]} : vector<8x24xf32> to vector<7x21xf32>
    %c2 = arith.constant 2 : index
    %c0_8 = arith.constant 0 : index
    %c0_9 = arith.constant 0 : index
    %12 = vector.load %arg5[%c2, %c0_8, %c0_9] : memref<4x21x112xf32, #tpu.memory_space<vmem>>, vector<1x21x112xf32>
    %13 = vector.shape_cast %12 : vector<1x21x112xf32> to vector<21x112xf32>
    %cst_10 = arith.constant dense<0.000000e+00> : vector<7x112xf32>
    %14 = tpu.matmul %11, %13, %cst_10 {dimension_numbers = #tpu.dot_dimension_numbers<[1], [0], [0], [1], [0, 0, 1, 1], [], []>} : vector<7x21xf32>, vector<21x112xf32>, vector<7x112xf32> -> vector<7x112xf32>
    %15 = arith.addf %10, %14 : vector<7x112xf32>
    %16 = vector.extract_strided_slice %1 {offsets = [1, 3], sizes = [7, 21], strides = [1, 1]} : vector<8x24xf32> to vector<7x21xf32>
    %c3 = arith.constant 3 : index
    %c0_11 = arith.constant 0 : index
    %c0_12 = arith.constant 0 : index
    %17 = vector.load %arg5[%c3, %c0_11, %c0_12] : memref<4x21x112xf32, #tpu.memory_space<vmem>>, vector<1x21x112xf32>
    %18 = vector.shape_cast %17 : vector<1x21x112xf32> to vector<21x112xf32>
    %cst_13 = arith.constant dense<0.000000e+00> : vector<7x112xf32>
    %19 = tpu.matmul %16, %18, %cst_13 {dimension_numbers = #tpu.dot_dimension_numbers<[1], [0], [0], [1], [0, 0, 1, 1], [], []>} : vector<7x21xf32>, vector<21x112xf32>, vector<7x112xf32> -> vector<7x112xf32>
    %20 = arith.addf %15, %19 : vector<7x112xf32>
    %c0_14 = arith.constant 0 : index
    %c0_15 = arith.constant 0 : index
    %21 = vector.load %arg6[%c0_14, %c0_15] : memref<1x112xf32, #tpu.memory_space<vmem>>, vector<1x112xf32>
    %22 = vector.broadcast %21 : vector<1x112xf32> to vector<7x112xf32>
    %23 = arith.addf %20, %22 : vector<7x112xf32>
    %cst_16 = arith.constant 0.000000e+00 : f32
    %24 = vector.broadcast %cst_16 : f32 to vector<7x112xf32>
    %25 = arith.maximumf %23, %24 : vector<7x112xf32>
    %26 = vector.extract_strided_slice %25 {offsets = [0, 0], sizes = [1, 112], strides = [1, 1]} : vector<7x112xf32> to vector<1x112xf32>
    %27 = vector.extract_strided_slice %25 {offsets = [1, 0], sizes = [1, 112], strides = [1, 1]} : vector<7x112xf32> to vector<1x112xf32>
    %28 = arith.maximumf %26, %27 : vector<1x112xf32>
    %29 = vector.extract_strided_slice %25 {offsets = [2, 0], sizes = [1, 112], strides = [1, 1]} : vector<7x112xf32> to vector<1x112xf32>
    %30 = vector.extract_strided_slice %25 {offsets = [3, 0], sizes = [1, 112], strides = [1, 1]} : vector<7x112xf32> to vector<1x112xf32>
    %31 = arith.maximumf %29, %30 : vector<1x112xf32>
    %32 = vector.extract_strided_slice %25 {offsets = [4, 0], sizes = [1, 112], strides = [1, 1]} : vector<7x112xf32> to vector<1x112xf32>
    %33 = vector.extract_strided_slice %25 {offsets = [5, 0], sizes = [1, 112], strides = [1, 1]} : vector<7x112xf32> to vector<1x112xf32>
    %34 = arith.maximumf %32, %33 : vector<1x112xf32>
    %35 = tpu.concatenate %28, %31, %34 in 0 : vector<1x112xf32>, vector<1x112xf32>, vector<1x112xf32> -> vector<3x112xf32>
    %36 = vector.extract_strided_slice %35 {offsets = [0, 0], sizes = [3, 16], strides = [1, 1]} : vector<3x112xf32> to vector<3x16xf32>
    %37 = vector.extract_strided_slice %35 {offsets = [0, 16], sizes = [3, 16], strides = [1, 1]} : vector<3x112xf32> to vector<3x16xf32>
    %38 = arith.maximumf %36, %37 : vector<3x16xf32>
    %39 = vector.extract_strided_slice %35 {offsets = [0, 32], sizes = [3, 16], strides = [1, 1]} : vector<3x112xf32> to vector<3x16xf32>
    %40 = vector.extract_strided_slice %35 {offsets = [0, 48], sizes = [3, 16], strides = [1, 1]} : vector<3x112xf32> to vector<3x16xf32>
    %41 = arith.maximumf %39, %40 : vector<3x16xf32>
    %42 = vector.extract_strided_slice %35 {offsets = [0, 64], sizes = [3, 16], strides = [1, 1]} : vector<3x112xf32> to vector<3x16xf32>
    %43 = vector.extract_strided_slice %35 {offsets = [0, 80], sizes = [3, 16], strides = [1, 1]} : vector<3x112xf32> to vector<3x16xf32>
    %44 = arith.maximumf %42, %43 : vector<3x16xf32>
    %45 = tpu.concatenate %38, %41, %44 in 1 : vector<3x16xf32>, vector<3x16xf32>, vector<3x16xf32> -> vector<3x48xf32>
    %46 = vector.extract_strided_slice %45 {offsets = [0, 0], sizes = [2, 32], strides = [1, 1]} : vector<3x48xf32> to vector<2x32xf32>
    %c0_17 = arith.constant 0 : index
    %c0_18 = arith.constant 0 : index
    %c0_19 = arith.constant 0 : index
    %47 = vector.load %arg7[%c0_17, %c0_18, %c0_19] : memref<4x32x64xf32, #tpu.memory_space<vmem>>, vector<1x32x64xf32>
    %48 = vector.shape_cast %47 : vector<1x32x64xf32> to vector<32x64xf32>
    %cst_20 = arith.constant dense<0.000000e+00> : vector<2x64xf32>
    %49 = tpu.matmul %46, %48, %cst_20 {dimension_numbers = #tpu.dot_dimension_numbers<[1], [0], [0], [1], [0, 0, 1, 1], [], []>} : vector<2x32xf32>, vector<32x64xf32>, vector<2x64xf32> -> vector<2x64xf32>
    %50 = vector.extract_strided_slice %45 {offsets = [0, 16], sizes = [2, 32], strides = [1, 1]} : vector<3x48xf32> to vector<2x32xf32>
    %c1_21 = arith.constant 1 : index
    %c0_22 = arith.constant 0 : index
    %c0_23 = arith.constant 0 : index
    %51 = vector.load %arg7[%c1_21, %c0_22, %c0_23] : memref<4x32x64xf32, #tpu.memory_space<vmem>>, vector<1x32x64xf32>
    %52 = vector.shape_cast %51 : vector<1x32x64xf32> to vector<32x64xf32>
    %cst_24 = arith.constant dense<0.000000e+00> : vector<2x64xf32>
    %53 = tpu.matmul %50, %52, %cst_24 {dimension_numbers = #tpu.dot_dimension_numbers<[1], [0], [0], [1], [0, 0, 1, 1], [], []>} : vector<2x32xf32>, vector<32x64xf32>, vector<2x64xf32> -> vector<2x64xf32>
    %54 = arith.addf %49, %53 : vector<2x64xf32>
    %55 = vector.extract_strided_slice %45 {offsets = [1, 0], sizes = [2, 32], strides = [1, 1]} : vector<3x48xf32> to vector<2x32xf32>
    %c2_25 = arith.constant 2 : index
    %c0_26 = arith.constant 0 : index
    %c0_27 = arith.constant 0 : index
    %56 = vector.load %arg7[%c2_25, %c0_26, %c0_27] : memref<4x32x64xf32, #tpu.memory_space<vmem>>, vector<1x32x64xf32>
    %57 = vector.shape_cast %56 : vector<1x32x64xf32> to vector<32x64xf32>
    %cst_28 = arith.constant dense<0.000000e+00> : vector<2x64xf32>
    %58 = tpu.matmul %55, %57, %cst_28 {dimension_numbers = #tpu.dot_dimension_numbers<[1], [0], [0], [1], [0, 0, 1, 1], [], []>} : vector<2x32xf32>, vector<32x64xf32>, vector<2x64xf32> -> vector<2x64xf32>
    %59 = arith.addf %54, %58 : vector<2x64xf32>
    %60 = vector.extract_strided_slice %45 {offsets = [1, 16], sizes = [2, 32], strides = [1, 1]} : vector<3x48xf32> to vector<2x32xf32>
    %c3_29 = arith.constant 3 : index
    %c0_30 = arith.constant 0 : index
    %c0_31 = arith.constant 0 : index
    %61 = vector.load %arg7[%c3_29, %c0_30, %c0_31] : memref<4x32x64xf32, #tpu.memory_space<vmem>>, vector<1x32x64xf32>
    %62 = vector.shape_cast %61 : vector<1x32x64xf32> to vector<32x64xf32>
    %cst_32 = arith.constant dense<0.000000e+00> : vector<2x64xf32>
    %63 = tpu.matmul %60, %62, %cst_32 {dimension_numbers = #tpu.dot_dimension_numbers<[1], [0], [0], [1], [0, 0, 1, 1], [], []>} : vector<2x32xf32>, vector<32x64xf32>, vector<2x64xf32> -> vector<2x64xf32>
    %64 = arith.addf %59, %63 : vector<2x64xf32>
    %c0_33 = arith.constant 0 : index
    %c0_34 = arith.constant 0 : index
    %65 = vector.load %arg8[%c0_33, %c0_34] : memref<1x64xf32, #tpu.memory_space<vmem>>, vector<1x64xf32>
    %66 = vector.broadcast %65 : vector<1x64xf32> to vector<2x64xf32>
    %67 = arith.addf %64, %66 : vector<2x64xf32>
    %cst_35 = arith.constant 0.000000e+00 : f32
    %68 = vector.broadcast %cst_35 : f32 to vector<2x64xf32>
    %69 = arith.maximumf %67, %68 : vector<2x64xf32>
    %70 = vector.extract_strided_slice %69 {offsets = [0, 0], sizes = [1, 32], strides = [1, 1]} : vector<2x64xf32> to vector<1x32xf32>
    %c0_36 = arith.constant 0 : index
    %c0_37 = arith.constant 0 : index
    %c0_38 = arith.constant 0 : index
    %71 = vector.load %arg9[%c0_36, %c0_37, %c0_38] : memref<4x32x64xf32, #tpu.memory_space<vmem>>, vector<1x32x64xf32>
    %72 = vector.shape_cast %71 : vector<1x32x64xf32> to vector<32x64xf32>
    %cst_39 = arith.constant dense<0.000000e+00> : vector<1x64xf32>
    %73 = tpu.matmul %70, %72, %cst_39 {dimension_numbers = #tpu.dot_dimension_numbers<[1], [0], [0], [1], [0, 0, 1, 1], [], []>} : vector<1x32xf32>, vector<32x64xf32>, vector<1x64xf32> -> vector<1x64xf32>
    %74 = vector.extract_strided_slice %69 {offsets = [0, 32], sizes = [1, 32], strides = [1, 1]} : vector<2x64xf32> to vector<1x32xf32>
    %c1_40 = arith.constant 1 : index
    %c0_41 = arith.constant 0 : index
    %c0_42 = arith.constant 0 : index
    %75 = vector.load %arg9[%c1_40, %c0_41, %c0_42] : memref<4x32x64xf32, #tpu.memory_space<vmem>>, vector<1x32x64xf32>
    %76 = vector.shape_cast %75 : vector<1x32x64xf32> to vector<32x64xf32>
    %cst_43 = arith.constant dense<0.000000e+00> : vector<1x64xf32>
    %77 = tpu.matmul %74, %76, %cst_43 {dimension_numbers = #tpu.dot_dimension_numbers<[1], [0], [0], [1], [0, 0, 1, 1], [], []>} : vector<1x32xf32>, vector<32x64xf32>, vector<1x64xf32> -> vector<1x64xf32>
    %78 = arith.addf %73, %77 : vector<1x64xf32>
    %79 = vector.extract_strided_slice %69 {offsets = [1, 0], sizes = [1, 32], strides = [1, 1]} : vector<2x64xf32> to vector<1x32xf32>
    %c2_44 = arith.constant 2 : index
    %c0_45 = arith.constant 0 : index
    %c0_46 = arith.constant 0 : index
    %80 = vector.load %arg9[%c2_44, %c0_45, %c0_46] : memref<4x32x64xf32, #tpu.memory_space<vmem>>, vector<1x32x64xf32>
    %81 = vector.shape_cast %80 : vector<1x32x64xf32> to vector<32x64xf32>
    %cst_47 = arith.constant dense<0.000000e+00> : vector<1x64xf32>
    %82 = tpu.matmul %79, %81, %cst_47 {dimension_numbers = #tpu.dot_dimension_numbers<[1], [0], [0], [1], [0, 0, 1, 1], [], []>} : vector<1x32xf32>, vector<32x64xf32>, vector<1x64xf32> -> vector<1x64xf32>
    %83 = arith.addf %78, %82 : vector<1x64xf32>
    %84 = vector.extract_strided_slice %69 {offsets = [1, 32], sizes = [1, 32], strides = [1, 1]} : vector<2x64xf32> to vector<1x32xf32>
    %c3_48 = arith.constant 3 : index
    %c0_49 = arith.constant 0 : index
    %c0_50 = arith.constant 0 : index
    %85 = vector.load %arg9[%c3_48, %c0_49, %c0_50] : memref<4x32x64xf32, #tpu.memory_space<vmem>>, vector<1x32x64xf32>
    %86 = vector.shape_cast %85 : vector<1x32x64xf32> to vector<32x64xf32>
    %cst_51 = arith.constant dense<0.000000e+00> : vector<1x64xf32>
    %87 = tpu.matmul %84, %86, %cst_51 {dimension_numbers = #tpu.dot_dimension_numbers<[1], [0], [0], [1], [0, 0, 1, 1], [], []>} : vector<1x32xf32>, vector<32x64xf32>, vector<1x64xf32> -> vector<1x64xf32>
    %88 = arith.addf %83, %87 : vector<1x64xf32>
    %c0_52 = arith.constant 0 : index
    %c0_53 = arith.constant 0 : index
    %89 = vector.load %arg10[%c0_52, %c0_53] : memref<1x64xf32, #tpu.memory_space<vmem>>, vector<1x64xf32>
    %90 = arith.addf %88, %89 : vector<1x64xf32>
    %cst_54 = arith.constant 0.000000e+00 : f32
    %91 = vector.broadcast %cst_54 : f32 to vector<1x64xf32>
    %92 = arith.maximumf %90, %91 : vector<1x64xf32>
    %c0_55 = arith.constant 0 : index
    %c0_56 = arith.constant 0 : index
    %93 = vector.load %arg13[%c0_55, %c0_56] : memref<1x128xf32, #tpu.memory_space<vmem>>, vector<1x128xf32>
    %c0_57 = arith.constant 0 : index
    %c0_58 = arith.constant 0 : index
    %94 = vector.load %arg11[%c0_57, %c0_58] : memref<64x128xf32, #tpu.memory_space<vmem>>, vector<64x128xf32>
    %cst_59 = arith.constant dense<0.000000e+00> : vector<1x128xf32>
    %95 = tpu.matmul %92, %94, %cst_59 {dimension_numbers = #tpu.dot_dimension_numbers<[1], [0], [0], [1], [0, 0, 1, 1], [], []>} : vector<1x64xf32>, vector<64x128xf32>, vector<1x128xf32> -> vector<1x128xf32>
    %96 = arith.addf %93, %95 : vector<1x128xf32>
    %c0_60 = arith.constant 0 : index
    %c0_61 = arith.constant 0 : index
    %c0_62 = arith.constant 0 : index
    %97 = vector.load %arg2[%c0_60, %c0_61, %c0_62] : memref<1x1x32xf32, #tpu.memory_space<vmem>>, vector<1x1x32xf32>
    %98 = vector.shape_cast %97 : vector<1x1x32xf32> to vector<1x32xf32>
    %c0_63 = arith.constant 0 : index
    %c0_64 = arith.constant 0 : index
    %c0_65 = arith.constant 0 : index
    %99 = vector.load %arg3[%c0_63, %c0_64, %c0_65] : memref<1x1x32xf32, #tpu.memory_space<vmem>>, vector<1x1x32xf32>
    %100 = vector.shape_cast %99 : vector<1x1x32xf32> to vector<1x32xf32>
    %c0_66 = arith.constant 0 : index
    %c0_67 = arith.constant 0 : index
    %101 = vector.load %arg12[%c0_66, %c0_67] : memref<32x128xf32, #tpu.memory_space<vmem>>, vector<32x128xf32>
    %cst_68 = arith.constant dense<0.000000e+00> : vector<1x128xf32>
    %102 = tpu.matmul %98, %101, %cst_68 {dimension_numbers = #tpu.dot_dimension_numbers<[1], [0], [0], [1], [0, 0, 1, 1], [], []>} : vector<1x32xf32>, vector<32x128xf32>, vector<1x128xf32> -> vector<1x128xf32>
    %103 = arith.addf %96, %102 : vector<1x128xf32>
    %104 = vector.extract_strided_slice %103 {offsets = [0, 0], sizes = [1, 96], strides = [1, 1]} : vector<1x128xf32> to vector<1x96xf32>
    %cst_69 = arith.constant 0.000000e+00 : f32
    %105 = vector.broadcast %cst_69 : f32 to vector<1x96xf32>
    %106 = arith.subf %105, %104 : vector<1x96xf32>
    %107 = math.exp %106 : vector<1x96xf32>
    %cst_70 = arith.constant 1.000000e+00 : f32
    %108 = vector.broadcast %cst_70 : f32 to vector<1x96xf32>
    %109 = arith.addf %108, %107 : vector<1x96xf32>
    %110 = tpu.reciprocal %109 : vector<1x96xf32> -> vector<1x96xf32>
    %111 = vector.extract_strided_slice %103 {offsets = [0, 96], sizes = [1, 32], strides = [1, 1]} : vector<1x128xf32> to vector<1x32xf32>
    %112 = math.tanh %111 : vector<1x32xf32>
    %113 = vector.extract_strided_slice %110 {offsets = [0, 0], sizes = [1, 32], strides = [1, 1]} : vector<1x96xf32> to vector<1x32xf32>
    %114 = vector.extract_strided_slice %110 {offsets = [0, 32], sizes = [1, 32], strides = [1, 1]} : vector<1x96xf32> to vector<1x32xf32>
    %115 = vector.extract_strided_slice %110 {offsets = [0, 64], sizes = [1, 32], strides = [1, 1]} : vector<1x96xf32> to vector<1x32xf32>
    %116 = arith.mulf %114, %100 : vector<1x32xf32>
    %117 = arith.mulf %113, %112 : vector<1x32xf32>
    %118 = arith.addf %116, %117 : vector<1x32xf32>
    %119 = math.tanh %118 : vector<1x32xf32>
    %120 = arith.mulf %115, %119 : vector<1x32xf32>
    %c0_71 = arith.constant 0 : index
    %c0_72 = arith.constant 0 : index
    %121 = vector.load %arg14[%c0_71, %c0_72] : memref<32x5xf32, #tpu.memory_space<vmem>>, vector<32x5xf32>
    %cst_73 = arith.constant dense<0.000000e+00> : vector<1x5xf32>
    %122 = tpu.matmul %120, %121, %cst_73 {dimension_numbers = #tpu.dot_dimension_numbers<[1], [0], [0], [1], [0, 0, 1, 1], [], []>} : vector<1x32xf32>, vector<32x5xf32>, vector<1x5xf32> -> vector<1x5xf32>
    %c0_74 = arith.constant 0 : index
    %c0_75 = arith.constant 0 : index
    %c0_76 = arith.constant 0 : index
    %123 = vector.load %arg4[%c0_74, %c0_75, %c0_76] : memref<1x1x4xf32, #tpu.memory_space<vmem>>, vector<1x1x4xf32>
    %124 = vector.shape_cast %123 : vector<1x1x4xf32> to vector<1x4xf32>
    %c0_77 = arith.constant 0 : index
    %c0_78 = arith.constant 0 : index
    %125 = vector.load %arg15[%c0_77, %c0_78] : memref<4x5xf32, #tpu.memory_space<vmem>>, vector<4x5xf32>
    %cst_79 = arith.constant dense<0.000000e+00> : vector<1x5xf32>
    %126 = tpu.matmul %124, %125, %cst_79 {dimension_numbers = #tpu.dot_dimension_numbers<[1], [0], [0], [1], [0, 0, 1, 1], [], []>} : vector<1x4xf32>, vector<4x5xf32>, vector<1x5xf32> -> vector<1x5xf32>
    %127 = arith.addf %122, %126 : vector<1x5xf32>
    %c0_80 = arith.constant 0 : index
    %c0_81 = arith.constant 0 : index
    %128 = vector.load %arg16[%c0_80, %c0_81] : memref<1x5xf32, #tpu.memory_space<vmem>>, vector<1x5xf32>
    %129 = arith.addf %127, %128 : vector<1x5xf32>
    %c0_82 = arith.constant 0 : index
    %c0_83 = arith.constant 0 : index
    %c0_84 = arith.constant 0 : index
    %130 = vector.load %arg17[%c0_82, %c0_83, %c0_84] : memref<1x1x5xf32, #tpu.memory_space<vmem>>, vector<1x1x5xf32>
    %131 = vector.shape_cast %130 : vector<1x1x5xf32> to vector<1x5xf32>
    %132 = vector.shape_cast %129 : vector<1x5xf32> to vector<1x1x5xf32>
    tpu.vector_store %arg17[%c0_82, %c0_83, %c0_84], %132 {strides = array<i32>} : memref<1x1x5xf32, #tpu.memory_space<vmem>>, vector<1x1x5xf32>,
    %c0_85 = arith.constant 0 : index
    %c0_86 = arith.constant 0 : index
    %c0_87 = arith.constant 0 : index
    %133 = vector.load %arg18[%c0_85, %c0_86, %c0_87] : memref<1x1x32xf32, #tpu.memory_space<vmem>>, vector<1x1x32xf32>
    %134 = vector.shape_cast %133 : vector<1x1x32xf32> to vector<1x32xf32>
    %135 = vector.shape_cast %120 : vector<1x32xf32> to vector<1x1x32xf32>
    tpu.vector_store %arg18[%c0_85, %c0_86, %c0_87], %135 {strides = array<i32>} : memref<1x1x32xf32, #tpu.memory_space<vmem>>, vector<1x1x32xf32>,
    %c0_88 = arith.constant 0 : index
    %c0_89 = arith.constant 0 : index
    %c0_90 = arith.constant 0 : index
    %136 = vector.load %arg19[%c0_88, %c0_89, %c0_90] : memref<1x1x32xf32, #tpu.memory_space<vmem>>, vector<1x1x32xf32>
    %137 = vector.shape_cast %136 : vector<1x1x32xf32> to vector<1x32xf32>
    %138 = vector.shape_cast %118 : vector<1x32xf32> to vector<1x1x32xf32>
    tpu.vector_store %arg19[%c0_88, %c0_89, %c0_90], %138 {strides = array<i32>} : memref<1x1x32xf32, #tpu.memory_space<vmem>>, vector<1x1x32xf32>,
    return
  }
  func.func @transform_0(%arg0: i32) -> (i32, i32, i32) {
    %c0_i32 = arith.constant 0 : i32
    %c0_i32_0 = arith.constant 0 : i32
    %c0_i32_1 = arith.constant 0 : i32
    return %arg0, %c0_i32, %c0_i32_0 : i32, i32, i32
  }
  func.func @transform_1(%arg0: i32) -> (i32, i32, i32) {
    %c0_i32 = arith.constant 0 : i32
    %c0_i32_0 = arith.constant 0 : i32
    %c0_i32_1 = arith.constant 0 : i32
    return %arg0, %c0_i32, %c0_i32_0 : i32, i32, i32
  }
  func.func @transform_2(%arg0: i32) -> (i32, i32, i32) {
    %c0_i32 = arith.constant 0 : i32
    %c0_i32_0 = arith.constant 0 : i32
    %c0_i32_1 = arith.constant 0 : i32
    return %arg0, %c0_i32, %c0_i32_0 : i32, i32, i32
  }
  func.func @transform_3(%arg0: i32) -> (i32, i32, i32) {
    %c0_i32 = arith.constant 0 : i32
    %c0_i32_0 = arith.constant 0 : i32
    %c0_i32_1 = arith.constant 0 : i32
    return %arg0, %c0_i32, %c0_i32_0 : i32, i32, i32
  }
  func.func @transform_4(%arg0: i32) -> (i32, i32, i32) {
    %c0_i32 = arith.constant 0 : i32
    %c0_i32_0 = arith.constant 0 : i32
    %c0_i32_1 = arith.constant 0 : i32
    %c0_i32_2 = arith.constant 0 : i32
    return %c0_i32, %c0_i32_0, %c0_i32_1 : i32, i32, i32
  }
  func.func @transform_5(%arg0: i32) -> (i32, i32) {
    %c0_i32 = arith.constant 0 : i32
    %c0_i32_0 = arith.constant 0 : i32
    %c0_i32_1 = arith.constant 0 : i32
    return %c0_i32, %c0_i32_0 : i32, i32
  }
  func.func @transform_6(%arg0: i32) -> (i32, i32, i32) {
    %c0_i32 = arith.constant 0 : i32
    %c0_i32_0 = arith.constant 0 : i32
    %c0_i32_1 = arith.constant 0 : i32
    %c0_i32_2 = arith.constant 0 : i32
    return %c0_i32, %c0_i32_0, %c0_i32_1 : i32, i32, i32
  }
  func.func @transform_7(%arg0: i32) -> (i32, i32) {
    %c0_i32 = arith.constant 0 : i32
    %c0_i32_0 = arith.constant 0 : i32
    %c0_i32_1 = arith.constant 0 : i32
    return %c0_i32, %c0_i32_0 : i32, i32
  }
  func.func @transform_8(%arg0: i32) -> (i32, i32, i32) {
    %c0_i32 = arith.constant 0 : i32
    %c0_i32_0 = arith.constant 0 : i32
    %c0_i32_1 = arith.constant 0 : i32
    %c0_i32_2 = arith.constant 0 : i32
    return %c0_i32, %c0_i32_0, %c0_i32_1 : i32, i32, i32
  }
  func.func @transform_9(%arg0: i32) -> (i32, i32) {
    %c0_i32 = arith.constant 0 : i32
    %c0_i32_0 = arith.constant 0 : i32
    %c0_i32_1 = arith.constant 0 : i32
    return %c0_i32, %c0_i32_0 : i32, i32
  }
  func.func @transform_10(%arg0: i32) -> (i32, i32) {
    %c0_i32 = arith.constant 0 : i32
    %c0_i32_0 = arith.constant 0 : i32
    %c0_i32_1 = arith.constant 0 : i32
    return %c0_i32, %c0_i32_0 : i32, i32
  }
  func.func @transform_11(%arg0: i32) -> (i32, i32) {
    %c0_i32 = arith.constant 0 : i32
    %c0_i32_0 = arith.constant 0 : i32
    %c0_i32_1 = arith.constant 0 : i32
    return %c0_i32, %c0_i32_0 : i32, i32
  }
  func.func @transform_12(%arg0: i32) -> (i32, i32) {
    %c0_i32 = arith.constant 0 : i32
    %c0_i32_0 = arith.constant 0 : i32
    %c0_i32_1 = arith.constant 0 : i32
    return %c0_i32, %c0_i32_0 : i32, i32
  }
  func.func @transform_13(%arg0: i32) -> (i32, i32) {
    %c0_i32 = arith.constant 0 : i32
    %c0_i32_0 = arith.constant 0 : i32
    %c0_i32_1 = arith.constant 0 : i32
    return %c0_i32, %c0_i32_0 : i32, i32
  }
  func.func @transform_14(%arg0: i32) -> (i32, i32) {
    %c0_i32 = arith.constant 0 : i32
    %c0_i32_0 = arith.constant 0 : i32
    %c0_i32_1 = arith.constant 0 : i32
    return %c0_i32, %c0_i32_0 : i32, i32
  }
  func.func @transform_15(%arg0: i32) -> (i32, i32) {
    %c0_i32 = arith.constant 0 : i32
    %c0_i32_0 = arith.constant 0 : i32
    %c0_i32_1 = arith.constant 0 : i32
    return %c0_i32, %c0_i32_0 : i32, i32
  }
  func.func @transform_16(%arg0: i32) -> (i32, i32, i32) {
    %c0_i32 = arith.constant 0 : i32
    %c0_i32_0 = arith.constant 0 : i32
    %c0_i32_1 = arith.constant 0 : i32
    return %arg0, %c0_i32, %c0_i32_0 : i32, i32, i32
  }
  func.func @transform_17(%arg0: i32) -> (i32, i32, i32) {
    %c0_i32 = arith.constant 0 : i32
    %c0_i32_0 = arith.constant 0 : i32
    %c0_i32_1 = arith.constant 0 : i32
    return %arg0, %c0_i32, %c0_i32_0 : i32, i32, i32
  }
  func.func @transform_18(%arg0: i32) -> (i32, i32, i32) {
    %c0_i32 = arith.constant 0 : i32
    %c0_i32_0 = arith.constant 0 : i32
    %c0_i32_1 = arith.constant 0 : i32
    return %arg0, %c0_i32, %c0_i32_0 : i32, i32, i32
  }
}

</mosaic_0001>

<bundles_post_ra>
// kernel: intra_q_forward.1
= control target key start
LH: loop header
LB: loop body
LE: loop exit
PB: predicated region body
PF: predicated region fallthrough
CT: control target
= control target key end

     0   :  { %s3417_s0 = inlined_call_operand.vmem [shape: f32[2,8,24], index: 0, kind: input, shape index: {}]   ;;  %s3418_s1 = inlined_call_operand.vmem [shape: f32[2,1,32], index: 1, kind: input, shape index: {}]   ;;  %s3419_s2 = inlined_call_operand.vmem [shape: f32[2,1,32], index: 2, kind: input, shape index: {}]   ;;  %s3420_s3 = inlined_call_operand.vmem [shape: f32[2,1,4], index: 3, kind: input, shape index: {}]   ;;  %s3421_s4 = inlined_call_operand.vmem [shape: f32[4,21,112], index: 4, kind: input, shape index: {}]   ;;  %s3422_s5 = inlined_call_operand.vmem [shape: f32[1,112], index: 5, kind: input, shape index: {}]   ;;  %s3423_s6 = inlined_call_operand.vmem [shape: f32[4,32,64], index: 6, kind: input, shape index: {}]   ;;  %s3424_s7 = inlined_call_operand.vmem [shape: f32[1,64], index: 7, kind: input, shape index: {}]   ;;  %s3425_s8 = inlined_call_operand.vmem [shape: f32[4,32,64], index: 8, kind: input, shape index: {}]   ;;  %s3426_s9 = inlined_call_operand.vmem [shape: f32[1,64], index: 9, kind: input, shape index: {}]   ;;  %s3427_s10 = inlined_call_operand.hbm [shape: f32[64,128], index: 10, kind: input, shape index: {}]   ;;  %s3428_s11 = inlined_call_operand.hbm [shape: f32[32,128], index: 11, kind: input, shape index: {}]   ;;  %s3429_s12 = inlined_call_operand.vmem [shape: f32[1,128], index: 12, kind: input, shape index: {}]   ;;  %s3430_s13 = inlined_call_operand.vmem [shape: f32[32,5], index: 13, kind: input, shape index: {}]   ;;  %s3431_s14 = inlined_call_operand.vmem [shape: f32[4,5], index: 14, kind: input, shape index: {}]   ;;  %s3432_s15 = inlined_call_operand.vmem [shape: f32[1,5], index: 15, kind: input, shape index: {}]   ;;  %s3433_s16 = inlined_call_operand.hbm [shape: f32[2,1,5], index: 16, kind: output, shape index: {0}]   ;;  %s3434_s17 = inlined_call_operand.hbm [shape: f32[2,1,32], index: 17, kind: output, shape index: {1}]   ;;  %s3435_s18 = inlined_call_operand.hbm [shape: f32[2,1,32], index: 18, kind: output, shape index: {2}]  }
   0x1   :  { %3443 = sst [smem:[#allocation20_spill]] %s3417_s0 }
   0x2   :  { %3444 = sst [smem:[#allocation21_spill]] %s3418_s1 }
   0x3   :  { %3445 = sst [smem:[#allocation22_spill]] %s3419_s2 }
   0x4   :  { %3446 = sst [smem:[#allocation23_spill]] %s3420_s3 }
   0x5   :  { %3447 = sst [smem:[#allocation24_spill]] %s3427_s10 }
   0x6   :  { %3448 = sst [smem:[#allocation25_spill]] %s3428_s11 }
   0x7   :  { %24 = vsyncpa [#allocation3], 0 }
   0x8   :  { %25 = vsyncpa [#allocation6], 0 }
   0x9   :  { %26 = vsyncpa [#allocation4], 0 }
   0xa   :  { %28 = vsyncpa [#allocation4 + $0x1], 0 }
   0xb   :  { %29 = vsyncpa [#allocation9], 0 }
   0xc   :  { %31 = vsyncpa [#allocation9 + $0x1], 0  ;;  %s2929_s27 = smov 0   ;;  %s2931_s28 = smov 0  }
   0xd   :  { %s2933_s29 = smov 0   ;;  %s2935_s30 = smov 0  }
   0xe LB: > { %3449 = sst [smem:[#allocation15_spill]] %s2806_s27  ;;  %s2950_s0 = sadd.s32 4294967295, %s2818_s30   ;;  %s2818_s30 = sphi %s2935_s30, %s3472_s30   ;;  %s2814_s29 = sphi %s2933_s29, %s3474_s29   ;;  %s2810_s28 = sphi %s2931_s28, %s3476_s28   ;;  %s2806_s27 = sphi %s2929_s27, %s3475_s27  }
   0xf   : > { %3450 = sst [smem:[#allocation16_spill]] %s2814_s29  ;;  %s3436_s19 = sadd.s32 4294967294, %s2818_s30  }
  0x10   : > { %s2954_s1 = sadd.s32 1, %s2818_s30   ;;  %s400_s20 = sadd.s32 1, %s2814_s29 }
  0x11   : > { %3451 = sst [smem:[#allocation17_spill]] %s2954_s1  ;;  %s397_s21 = ssub.s32 %s2818_s30, %s2954_s1 }
  0x12   : > { %p410_p0 = scmp.ne.s32.totalorder %s2814_s29, %s2810_s28  ;;  %p398_p1 = scmp.eq.s32.totalorder %s397_s21, 0 }
  0x13   : > { %p411_p2 = scmp.eq.s32.totalorder %s2950_s0, 1  ;;  %p416_p3 = scmp.ne.s32.totalorder %s2810_s28, %s2806_s27 }
  0x14   : > { %p417_p4 = scmp.eq.s32.totalorder %s3436_s19, 1  ;;  %p2239_p7 = scmp.ge.s32.totalorder %s2818_s30, 1 }
  0x15   : > { %s2967_s22 = scalar_select %p398_p1, %s2814_s29, %s400_s20  }
  0x16   : > { %p2969_p5 = por %p411_p2, %p410_p0  ;;  %p2973_p6 = por %p417_p4, %p416_p3 }
  0x17   : > { %3452 = sst [smem:[#allocation18_spill]] %s2967_s22  ;;  %p476_p8 = scmp.lt.s32.totalorder %s2818_s30, 3 }
  0x18   : > { %s3454_s23 = scalar_select %p2973_p6, 1, 0 }
  0x19   : > { %p3441_p9 = scmp.eq.s32.totalorder %s2950_s0, 0  ;;  %p2980_p10 = pnand %p2239_p7, %p476_p8 }
  0x1a   : > { %3455 = sst [smem:[#allocation19_spill]] %s3454_s23  ;;  %s2820_s25 = smov [#allocation2]  }
  0x1b   : > { %s506_s26 = sshll.u32 %s2820_s25, 4  ;;  %p2569_p11 = pneg %p2980_p10  ;;  %s507_s26 = int_to_ptr.vmem [resolvable:$true] %s506_s26 }
  0x1c   : > { %s2821_s21 = smov [#allocation5]   ;;  %s2653_s22 = scalar_lea.vmem %s507_s26, 1024 }
  0x1d   : > { %p2988_p12 = pnand %p3441_p9, %p2569_p11  ;;  %s519_s19 = sshll.u32 %s2821_s21, 4  ;;  %s520_s19 = int_to_ptr.vmem [resolvable:$true] %s519_s19 }
  0x1e   : > { %p2654_p0 = scmp.ne.s32.totalorder %s507_s26, %s2653_s22  ;;  %p2661_p3 = scmp.lt.s32.totalorder %s507_s26, %s507_s26 }
  0x1f   : > { %p2644_p13 = pneg %p2988_p12  ;;  %p2662_p4 = scmp.lt.s32.totalorder %s2653_s22, %s2653_s22 }
  0x21   : > { %p2656_p1 = pnand %p2654_p0, %p2644_p13  ;;  %p2663_p7 = por %p2662_p4, %p2661_p3 }
  0x23   : > { %p2657_p2 = pneg %p2656_p1 }
  0x25   : > { %p2664_p8 = pnand %p2663_p7, %p2657_p2 }
  0x27   : > { %2667 = shalt.err (!%p2664_p8)
}
  0x28   : > { %s2822_s25 = smov 128   ;;  %s2823_s29 = smov 8  }
  0x29   : > { %s3458_s10 = sld [smem:[#allocation24_spill]]  ;;  %s2679_s23 = scalar_lea.vmem %s520_s19, 512 }
  0x2a   : > { %p2680_p11 = scmp.ne.s32.totalorder %s520_s19, %s2679_s23  ;;  %p2687_p9 = scmp.lt.s32.totalorder %s520_s19, %s520_s19 }
  0x2b   : > { %p2688_p6 = scmp.lt.s32.totalorder %s2679_s23, %s2679_s23 }
  0x2c   : > { %p2682_p0 = pnand %p2680_p11, %p2644_p13 }
  0x2d   : > { %p2689_p3 = por %p2688_p6, %p2687_p9 }
  0x2e   : > { %p2683_p1 = pneg %p2682_p0 }
  0x2f   : > { %2572 = dma.hbm_to_vmem [thread:$0]  (!%p2988_p12), %s3458_s10, 1024, %s507_s26, [#allocation3], %s2822_s25, %s2822_s25, %s2823_s29  }
  0x30   : > { %p2690_p2 = pnand %p2689_p3, %p2683_p1 }
  0x32   : > { %2693 = shalt.err (!%p2690_p2)
}
  0x33   : > { %s3459_s11 = sld [smem:[#allocation25_spill]]  ;;  %p3460_p4 = scmp.eq.s32.totalorder (!%p2980_p10), %s2950_s0, 0 }
  0x35   : > { %572 = sbr.rel (%p2980_p10) target bundleno = 2185 (0x889), region = 84 }
  0x39   : > { %2575 = dma.hbm_to_vmem [thread:$0]  (!%p2988_p12), %s3459_s11, 512, %s520_s19, [#allocation6], %s2822_s25, %s2822_s25, %s2823_s29  }
  0x3a   : > { %2789 = dma.done.wait (%p3460_p4), [#allocation3], 1024   ;;  %p3461_p13 = pmov %p3460_p4 }
  0x3b   : > { %p3462_p7 = pmov %p3460_p4 }
  0x3c   : > { %2791 = vsyncadd (%p3461_p13), [#allocation3], 4294966272 }
  0x3d   : > { %2793 = dma.done.wait (%p3462_p7), [#allocation6], 512   ;;  %p3463_p6 = pmov %p3460_p4 }
  0x3e   : > { %p645_p9 = scmp.lt.s32.totalorder %s2950_s0, 1  ;;  %v2824_v0 = vmov 0.0   ;;  %vm2825_vm0 = vmmov 0   ;;  %s3464_s23 = sld [smem:[#allocation20_spill]]  ;;  %vm672_vm1 = vcmask 1044480   ;;  %v2248_v5 = vld [vmem:[%s3421_s4 + $0x20] sm:$0xff] }
  0x3f   : > { %2795 = vsyncadd (%p3463_p6), [#allocation6], 4294966784  ;;  %2385 = vmatprep.subr.mxu0 %v2824_v0  ;;  %2394 = vmatprep.subr.mxu1 %v2824_v0  ;;  %v2249_v2 = vld [vmem:[%s3421_s4 + $0x28] sm:$0x1f]  ;;  %v661_v3 = vld [vmem:[%s3421_s4 + $0x10] sm:$0x1f] }
  0x40   : > { %s3024_s27 = scalar_select %p645_p9, %s2950_s0, 1  ;;  %2391 = vmatprep.mubr.msk.f32.mxu0 %vm2825_vm0, %v2824_v0  ;;  %2400 = vmatprep.mubr.msk.f32.mxu1 %vm2825_vm0, %v2824_v0  ;;  %v660_v6 = vld [vmem:[%s3421_s4 + $0x8] sm:$0xff]  ;;  %v2247_v7 = vld [vmem:[%s3421_s4 + $0x18] sm:$0xff]  ;;  %v659_v8 = vld [vmem:[%s3421_s4] sm:$0xff]  ;;  %vm669_vm2 = vcmask 171008   ;;  %vm1002_vm3 = vcmask 1040384  }
  0x41   : > { %s2826_s22 = smov 125   ;;  %2386 = vmatpush3.msk.msra.mxu0 %vm672_vm1, %v2249_v2  ;;  %2395 = vmatpush3.msk.msra.mxu1 %vm672_vm1, %v661_v3  ;;  %v2261_v9 = vld [vmem:[%s3421_s4 + $0x58] sm:$0x1f]  ;;  %v2260_v10 = vld [vmem:[%s3421_s4 + $0x50] sm:$0xff]  ;;  %v2259_v11 = vld [vmem:[%s3421_s4 + $0x48] sm:$0xff]  ;;  %vm1004_vm4 = vcmask 1041408  }
  0x42   : > { %s2246_s29 = sshll.u32 %s3024_s27, 3  ;;  %2387 = vmatprep.subr.mxu0 %v2824_v0  ;;  %2396 = vmatprep.subr.mxu1 %v2824_v0  ;;  %v2256_v12 = vld [vmem:[%s3421_s4 + $0x40] sm:$0x1f]  ;;  %v2255_v14 = vld [vmem:[%s3421_s4 + $0x38] sm:$0xff]  ;;  %v2254_v15 = vld [vmem:[%s3421_s4 + $0x30] sm:$0xff]  ;;  %s2827_s1 = smov 112  }
  0x43   : > { %2388 = vmatpush3.msra.mxu0 %v2248_v5  ;;  %2397 = vmatpush3.msra.mxu1 %v660_v6  ;;  %v2264_v26 = vld [vmem:[%s3422_s5] ss:$0 sm:$0xff]  ;;  %v1025_v30 = vld [vmem:[%s3423_s6 + $0x18] sm:$0xff]  ;;  %v1024_v31 = vld [vmem:[%s3423_s6 + $0x10] sm:$0xff]  ;;  %s2828_s19 = smov 96   ;;  %vm1018_vm5 = vcmask 130048  }
  0x44   : > { %s648_s24 = scalar_lea.vmem %s3464_s23, %s2246_s29  ;;  %2389 = vmatprep.subr.mxu0 %v2824_v0  ;;  %2398 = vmatprep.subr.mxu1 %v2824_v0  ;;  %v1023_v33 = vld [vmem:[%s3423_s6 + $0x8] sm:$0xff]  ;;  %v1022_v40 = vld [vmem:[%s3423_s6] sm:$0xff]  ;;  %v2268_v41 = vld [vmem:[%s3423_s6 + $0x38] sm:$0xff]  ;;  %vm1020_vm6 = vcmask 261120   ;;  %s2829_s10 = smov 32   ;;  %vm1673_vm7 = vcmask 523264  }
  0x45   : > { %v658_v1 = vld [vmem:[%s648_s24] sm:$0xff]  ;;  %2390 = vmatpush3.msra.mxu0 %v2247_v7  ;;  %2399 = vmatpush3.msra.mxu1 %v659_v8  ;;  %v2267_v42 = vld [vmem:[%s3423_s6 + $0x30] sm:$0xff]  ;;  %v2266_v43 = vld [vmem:[%s3423_s6 + $0x28] sm:$0xff]  ;;  %s3466_s24 = sld [smem:[#allocation22_spill]]  ;;  %vm1865_vm8 = vcmask 1043456   ;;  %vm1861_vm9 = vcmask 31744  }
  0x46   : > { %667 = vrot.lane.b32.xlu0 %v658_v1, %s2826_s22  ;;  %v825_v4 = vrot.slane %v658_v1, 1  ;;  %2403 = vmatprep.subr.mxu0 %v2824_v0  ;;  %v2265_v44 = vld [vmem:[%s3423_s6 + $0x20] sm:$0xff]  ;;  %v2279_v50 = vld [vmem:[%s3423_s6 + $0x78] sm:$0xff]  ;;  %v2278_v53 = vld [vmem:[%s3423_s6 + $0x70] sm:$0xff]  ;;  %s3467_s3 = sld [smem:[#allocation23_spill]]  ;;  %s3323_s29 = sand.u32 1, %s2810_s28  }
  0x47   : > { %2412 = vmatprep.subr.mxu1 %v2824_v0  ;;  %2401 = vmatmul.mubr.msk.f32.vlgmr.msra.gmra.mxu1 %vm669_vm2, %v658_v1  ;;  %v2277_v54 = vld [vmem:[%s3423_s6 + $0x68] sm:$0xff]  ;;  %v2276_v55 = vld [vmem:[%s3423_s6 + $0x60] sm:$0xff]  ;;  %v2274_v56 = vld [vmem:[%s3423_s6 + $0x58] sm:$0xff]  ;;  %vm2023_vm10 = vcmask 253952   ;;  %s644_s23 = scalar_lea.vmem [#allocation10], %s3323_s29 }
  0x48   : > { %2413 = vmatpush3.msk.msra.mxu1 %vm672_vm1, %v2261_v9  ;;  %2418 = vmatprep.mubr.msk.f32.mxu1 %vm2825_vm0, %v2824_v0  ;;  %v2273_v58 = vld [vmem:[%s3423_s6 + $0x50] sm:$0xff]  ;;  %v2272_v60 = vld [vmem:[%s3423_s6 + $0x48] sm:$0xff]  ;;  %v2271_v61 = vld [vmem:[%s3423_s6 + $0x40] sm:$0xff]  ;;  %s2081_s21 = sshll.u32 %s644_s23, 4  ;;  %s2082_s21 = int_to_ptr.vmem [resolvable:$true] %s2081_s21 }
  0x49   : > { %2414 = vmatprep.subr.mxu1 %v2824_v0  ;;  %v1349_v62 = vld [vmem:[%s3425_s8 + $0x18] sm:$0xff]  ;;  %v1348_v63 = vld [vmem:[%s3425_s8 + $0x10] sm:$0xff]  ;;  %v1347_v1 = vld [vmem:[%s3425_s8 + $0x8] sm:$0xff] }
  0x4a   : > { %906 = vrot.lane.b32.xlu0 %v825_v4, %s2826_s22  ;;  %2415 = vmatpush3.msra.mxu1 %v2260_v10  ;;  %v1346_v3 = vld [vmem:[%s3425_s8] sm:$0xff]  ;;  %v2285_v5 = vld [vmem:[%s3425_s8 + $0x38] sm:$0xff]  ;;  %v2284_v6 = vld [vmem:[%s3425_s8 + $0x30] sm:$0xff] }
  0x4b   : > { %2416 = vmatprep.subr.mxu1 %v2824_v0  ;;  %v2283_v7 = vld [vmem:[%s3425_s8 + $0x28] sm:$0xff]  ;;  %v2282_v8 = vld [vmem:[%s3425_s8 + $0x20] sm:$0xff]  ;;  %s654_s26 = scalar_lea.vmem %s3466_s24, %s3024_s27 }
  0x4c   : > { %2417 = vmatpush3.msra.mxu1 %v2259_v11  ;;  %s657_s24 = scalar_lea.vmem %s3467_s3, %s3024_s27 }
  0x4d   : > { %2432 = vmatprep.subr.mxu1 %v2824_v0 }
  0xb8   : > { %v668_v13 = vpop.permute.xlu0 %667 }
  0xb9   : > { %2392 = vmatmul.mubr.msk.f32.vlgmr.msra.gmra.mxu0 %vm669_vm2, %v668_v13 }
  0xba   : > { %2404 = vmatpush3.msk.msra.mxu0 %vm672_vm1, %v2256_v12  ;;  %2409 = vmatprep.mubr.msk.f32.mxu0 %vm2825_vm0, %v2824_v0 }
  0xbb   : > { %2405 = vmatprep.subr.mxu0 %v2824_v0 }
  0xbc   : > { %2406 = vmatpush3.msra.mxu0 %v2255_v14  ;;  %v907_v16 = vpop.permute.xlu0 %906 }
  0xbd   : > { %2407 = vmatprep.subr.mxu0 %v2824_v0  ;;  %2419 = vmatmul.mubr.msk.f32.vlgmr.msra.gmra.mxu1 %vm669_vm2, %v907_v16 }
  0xbe   : > { %2408 = vmatpush3.msra.mxu0 %v2254_v15  ;;  %2440 = vmatprep.mubr.msk.f32.mxu1 %vm2825_vm0, %v2824_v0 }
  0xbf   : > { %2410 = vmatmul.mubr.msk.f32.vlgmr.msra.gmra.mxu0 %vm669_vm2, %v825_v4  ;;  %2421 = vmatprep.subr.mxu0 %v2824_v0 }
  0xc0   : > { %2429 = vmatprep.mubr.msk.f32.mxu0 %vm2825_vm0, %v2824_v0  ;;  %2433 = vmatpush3.msra.mxu1 %v1025_v30  ;;  %v2289_v30 = vld [vmem:[%s3425_s8 + $0x48] sm:$0xff] }
  0xc1   : > { %2434 = vmatprep.subr.mxu1 %v2824_v0  ;;  %2422 = vmatpush3.msra.mxu0 %v2268_v41  ;;  %v1666_v41 = vld [vmem:[#allocation2 + $0x8] sm:$0xff] }
  0xc2   : > { %2435 = vmatpush3.msra.mxu1 %v1024_v31  ;;  %2423 = vmatprep.subr.mxu0 %v2824_v0  ;;  %v2288_v31 = vld [vmem:[%s3425_s8 + $0x40] sm:$0xff] }
  0xc3   : > { %2436 = vmatprep.subr.mxu1 %v2824_v0  ;;  %2424 = vmatpush3.msra.mxu0 %v2267_v42  ;;  %v1751_v42 = vld [vmem:[#allocation5 + $0x8] sm:$0xff] }
  0xc4   : > { %2437 = vmatpush3.msra.mxu1 %v1023_v33  ;;  %2425 = vmatprep.subr.mxu0 %v2824_v0  ;;  %v1671_v33 = vld [vmem:[#allocation2 + $0x30] sm:$0xff] }
  0xc5   : > { %2438 = vmatprep.subr.mxu1 %v2824_v0  ;;  %2426 = vmatpush3.msra.mxu0 %v2266_v43 }
  0xc6   : > { %2439 = vmatpush3.msra.mxu1 %v1022_v40  ;;  %2427 = vmatprep.subr.mxu0 %v2824_v0 }
  0xc7   : > { %2454 = vmatprep.subr.mxu1 %v2824_v0  ;;  %2428 = vmatpush3.msra.mxu0 %v2265_v44  ;;  %v1665_v44 = vld [vmem:[#allocation2] sm:$0xff] }
  0xc8   : > { %2443 = vmatprep.subr.mxu0 %v2824_v0 }
 0x107   : > { %v817_v17 = vpop.f32.mrf.mxu1 }
 0x109   : > { %v2402_v18 = vpop.f32.mrf.mxu1 }
 0x179   : > { %v742_v19 = vpop.f32.mrf.mxu0 }
 0x17a   : > { %v818_v22 = vadd.f32 %v817_v17, %v742_v19  ;;  %v2281_v17 = vld [vmem:[%s3424_s7] ss:$0 sm:$0xff] }
 0x17b   : > { %v2393_v20 = vpop.f32.mrf.mxu0 }
 0x17d   : > { %v979_v21 = vpop.f32.mrf.mxu1 }
 0x17f   : > { %v897_v23 = vpop.f32.mrf.mxu0  ;;  %v2420_v24 = vpop.f32.mrf.mxu1 }
 0x180   : > { %v901_v25 = vadd.f32 %v897_v23, %v818_v22  ;;  %v2295_v23 = vld [vmem:[%s3425_s8 + $0x70] sm:$0xff]  ;;  %v2294_v24 = vld [vmem:[%s3425_s8 + $0x68] sm:$0xff] }
 0x181   : > { %v2411_v27 = vpop.f32.mrf.mxu0 }
 0x182   : > { %v983_v28 = vadd.f32 %v979_v21, %v901_v25  ;;  %v2296_v21 = vld [vmem:[%s3425_s8 + $0x78] sm:$0xff]  ;;  %v2293_v25 = vld [vmem:[%s3425_s8 + $0x60] sm:$0xff] }
 0x184   : > { %v991_v29 = vadd.f32 %v2264_v26, %v983_v28  ;;  %v2291_v26 = vld [vmem:[%s3425_s8 + $0x58] sm:$0xff]  ;;  %v2290_v28 = vld [vmem:[%s3425_s8 + $0x50] sm:$0xff] }
 0x186   : > { %v992_v32 = vmax.f32 %v991_v29, 0.0 }
 0x188   : > { %v994_v34 = vrot.slane %v992_v32, 1 }
 0x18a   : > { %v996_v35 = vmax.f32 %v992_v32, %v994_v34  ;;  %v1672_v32 = vld [vmem:[#allocation2 + $0x38] sm:$0xff]  ;;  %v1670_v34 = vld [vmem:[#allocation2 + $0x28] sm:$0xff] }
 0x18c   : > { %v998_v36 = vrot.slane %v996_v35, 1  ;;  %v1000_v37 = vrot.slane %v996_v35, 2 }
 0x18e   : > { %v1003_v38 = vsel %vm1002_vm3, %v996_v35, %v998_v36  ;;  %v1669_v35 = vld [vmem:[#allocation2 + $0x20] sm:$0xff]  ;;  %v1668_v36 = vld [vmem:[#allocation2 + $0x18] sm:$0xff] }
 0x18f   : > { %v1005_v39 = vsel %vm1004_vm4, %v1003_v38, %v1000_v37  ;;  %v1753_v37 = vld [vmem:[#allocation5 + $0x18] sm:$0xff]  ;;  %v1667_v38 = vld [vmem:[#allocation2 + $0x10] sm:$0xff] }
 0x190   : > { %1007 = vrot.lane.b32.xlu1 %v1005_v39, %s2827_s1 }
 0x202   : > { %v1008_v45 = vpop.permute.xlu1 %1007 }
 0x203   : > { %v1010_v46 = vmax.f32 %v1005_v39, %v1008_v45  ;;  %v1752_v39 = vld [vmem:[#allocation5 + $0x10] sm:$0xff]  ;;  %v1750_v45 = vld [vmem:[#allocation5] sm:$0xff] }
 0x205   : > { %1015 = vrot.lane.b32.xlu0 %v1010_v46, %s2828_s19  ;;  %1012 = vrot.lane.b32.xlu1 %v1010_v46, %s2827_s1 }
 0x277   : > { %v1016_v47 = vpop.permute.xlu0 %1015  ;;  %v1013_v48 = vpop.permute.xlu1 %1012 }
 0x278   : > { %v1019_v49 = vsel %vm1018_vm5, %v1010_v46, %v1013_v48 }
 0x279   : > { %v1021_v51 = vsel %vm1020_vm6, %v1019_v49, %v1016_v47  ;;  %v1749_v47 = vld [vmem:[%s654_s26] sm:$0x1]  ;;  %s3332_s26 = sshll.u32 %s2950_s0, 4 }
 0x27a   : > { %1032 = vrot.lane.b32.xlu1 %v1021_v51, %s2827_s1  ;;  %2441 = vmatmul.mubr.msk.f32.vlgmr.msra.gmra.mxu1 %vm1020_vm6, %v1021_v51  ;;  %v1183_v52 = vrot.slane %v1021_v51, 1  ;;  %s3338_s25 = scalar_lea.hbm %s3434_s17, %s3332_s26 }
 0x27b   : > { %2455 = vmatpush3.msra.mxu1 %v2279_v50  ;;  %2462 = vmatprep.mubr.msk.f32.mxu1 %vm2825_vm0, %v2824_v0 }
 0x27c   : > { %1262 = vrot.lane.b32.xlu0 %v1183_v52, %s2827_s1  ;;  %2456 = vmatprep.subr.mxu1 %v2824_v0  ;;  %s3465_s1 = sld [smem:[#allocation21_spill]] }
 0x27d   : > { %2457 = vmatpush3.msra.mxu1 %v2278_v53 }
 0x27e   : > { %2458 = vmatprep.subr.mxu1 %v2824_v0 }
 0x27f   : > { %2459 = vmatpush3.msra.mxu1 %v2277_v54 }
 0x280   : > { %2460 = vmatprep.subr.mxu1 %v2824_v0 }
 0x281   : > { %2461 = vmatpush3.msra.mxu1 %v2276_v55  ;;  %v1661_v55 = vld [vmem:[%s3426_s9] sm:$0x1] }
 0x282   : > { %2476 = vmatprep.subr.mxu1 %v2824_v0  ;;  %s651_s22 = scalar_lea.vmem %s3465_s1, %s3024_s27 }
 0x283   : > { %v1748_v46 = vld [vmem:[%s651_s22] sm:$0x1] }
 0x2ec   : > { %v1033_v57 = vpop.permute.xlu1 %1032 }
 0x2ed   : > { %2430 = vmatmul.mubr.msk.f32.vlgmr.msra.gmra.mxu0 %vm1020_vm6, %v1033_v57 }
 0x2ee   : > { %2444 = vmatpush3.msra.mxu0 %v2274_v56  ;;  %v1263_v59 = vpop.permute.xlu0 %1262  ;;  %2451 = vmatprep.mubr.msk.f32.mxu0 %vm2825_vm0, %v2824_v0 }
 0x2ef   : > { %2445 = vmatprep.subr.mxu0 %v2824_v0  ;;  %2463 = vmatmul.mubr.msk.f32.vlgmr.msra.gmra.mxu1 %vm1020_vm6, %v1263_v59 }
 0x2f0   : > { %2446 = vmatpush3.msra.mxu0 %v2273_v58  ;;  %2484 = vmatprep.mubr.msk.f32.mxu1 %vm2825_vm0, %v2824_v0 }
 0x2f1   : > { %2447 = vmatprep.subr.mxu0 %v2824_v0  ;;  %2477 = vmatpush3.msra.mxu1 %v1349_v62  ;;  %v1664_v62 = vld [vmem:[%s3429_s12] sm:$0x1] }
 0x2f2   : > { %2448 = vmatpush3.msra.mxu0 %v2272_v60  ;;  %2478 = vmatprep.subr.mxu1 %v2824_v0 }
 0x2f3   : > { %2449 = vmatprep.subr.mxu0 %v2824_v0  ;;  %2479 = vmatpush3.msra.mxu1 %v1348_v63 }
 0x2f4   : > { %2450 = vmatpush3.msra.mxu0 %v2271_v61  ;;  %2480 = vmatprep.subr.mxu1 %v2824_v0 }
 0x2f5   : > { %2452 = vmatmul.mubr.msk.f32.vlgmr.msra.gmra.mxu0 %vm1020_vm6, %v1183_v52  ;;  %2465 = vmatprep.subr.mxu0 %v2824_v0 }
 0x2f6   : > { %2473 = vmatprep.mubr.msk.f32.mxu0 %vm2825_vm0, %v2824_v0  ;;  %2481 = vmatpush3.msra.mxu1 %v1347_v1 }
 0x2f7   : > { %2482 = vmatprep.subr.mxu1 %v2824_v0  ;;  %2466 = vmatpush3.msra.mxu0 %v2285_v5 }
 0x2f8   : > { %2483 = vmatpush3.msra.mxu1 %v1346_v3  ;;  %2467 = vmatprep.subr.mxu0 %v2824_v0 }
 0x2f9   : > { %2498 = vmatprep.subr.mxu1 %v2824_v0  ;;  %2468 = vmatpush3.msra.mxu0 %v2284_v6 }
 0x2fa   : > { %2469 = vmatprep.subr.mxu0 %v2824_v0 }
 0x2fb   : > { %2470 = vmatpush3.msra.mxu0 %v2283_v7 }
 0x2fc   : > { %2471 = vmatprep.subr.mxu0 %v2824_v0 }
 0x2fd   : > { %2472 = vmatpush3.msra.mxu0 %v2282_v8 }
 0x2fe   : > { %2487 = vmatprep.subr.mxu0 %v2824_v0 }
 0x33a   : > { %v1174_v2 = vpop.f32.mrf.mxu1 }
 0x33c   : > { %v2442_v4 = vpop.f32.mrf.mxu1 }
 0x3ad   : > { %v1102_v9 = vpop.f32.mrf.mxu0 }
 0x3ae   : > { %v1175_v13 = vadd.f32 %v1174_v2, %v1102_v9 }
 0x3af   : > { %v2431_v10 = vpop.f32.mrf.mxu0  ;;  %v1332_v11 = vpop.f32.mrf.mxu1 }
 0x3b1   : > { %v2464_v12 = vpop.f32.mrf.mxu1 }
 0x3b5   : > { %v1252_v14 = vpop.f32.mrf.mxu0 }
 0x3b6   : > { %v1256_v15 = vadd.f32 %v1252_v14, %v1175_v13 }
 0x3b7   : > { %v2453_v16 = vpop.f32.mrf.mxu0 }
 0x3b8   : > { %v1336_v18 = vadd.f32 %v1332_v11, %v1256_v15  ;;  %v1940_v16 = vlaneseq }
 0x3ba   : > { %v1344_v19 = vadd.f32 %v2281_v17, %v1336_v18  ;;  %v1860_v17 = vld [vmem:[%s3431_s14] sm:$0xf]  ;;  %v1858_v18 = vld [vmem:[%s3430_s13 + $0x18] sm:$0xff] }
 0x3bc   : > { %v1345_v20 = vmax.f32 %v1344_v19, 0.0  ;;  %v1859_v19 = vld [vmem:[%s657_s24] sm:$0x1]  ;;  %s2830_s24 = smov 64  }
 0x3be   : > { %1356 = vrot.lane.b32.xlu1 %v1345_v20, %s2828_s19  ;;  %2485 = vmatmul.mubr.msk.f32.vlgmr.msra.gmra.mxu1 %vm1020_vm6, %v1345_v20  ;;  %v1507_v22 = vrot.slane %v1345_v20, 1  ;;  %v1857_v20 = vld [vmem:[%s3430_s13 + $0x10] sm:$0xff] }
 0x3bf   : > { %2499 = vmatpush3.msra.mxu1 %v2296_v21  ;;  %2506 = vmatprep.mubr.msk.f32.mxu1 %vm2825_vm0, %v2824_v0  ;;  %v1941_v21 = vshrl.u32 %v1940_v16, 7 }
 0x3c0   : > { %1586 = vrot.lane.b32.xlu0 %v1507_v22, %s2828_s19  ;;  %2500 = vmatprep.subr.mxu1 %v2824_v0 }
 0x3c1   : > { %2501 = vmatpush3.msra.mxu1 %v2295_v23  ;;  %v1855_v23 = vld [vmem:[%s3430_s13] sm:$0xff] }
 0x3c2   : > { %2502 = vmatprep.subr.mxu1 %v2824_v0 }
 0x3c3   : > { %2503 = vmatpush3.msra.mxu1 %v2294_v24  ;;  %v1942_v24 = vsub.s32 0, %v1941_v21 }
 0x3c4   : > { %2504 = vmatprep.subr.mxu1 %v2824_v0  ;;  %1835 = vrot.lane.b32.xlu0 %v1749_v47, %s2829_s10 }
 0x3c5   : > { %2505 = vmatpush3.msra.mxu1 %v2293_v25 }
 0x3c6   : > { %2528 = vmatprep.subr.mxu1 %v2824_v0 }
 0x430   : > { %v1357_v27 = vpop.permute.xlu1 %1356 }
 0x431   : > { %2474 = vmatmul.mubr.msk.f32.vlgmr.msra.gmra.mxu0 %vm1020_vm6, %v1357_v27 }
 0x432   : > { %2488 = vmatpush3.msra.mxu0 %v2291_v26  ;;  %v1587_v29 = vpop.permute.xlu0 %1586  ;;  %2495 = vmatprep.mubr.msk.f32.mxu0 %vm2825_vm0, %v2824_v0 }
 0x433   : > { %2489 = vmatprep.subr.mxu0 %v2824_v0  ;;  %2507 = vmatmul.mubr.msk.f32.vlgmr.msra.gmra.mxu1 %vm1020_vm6, %v1587_v29 }
 0x434   : > { %2490 = vmatpush3.msra.mxu0 %v2290_v28  ;;  %2536 = vmatprep.mubr.msk.f32.mxu1 %vm2825_vm0, %v2824_v0 }
 0x435   : > { %2491 = vmatprep.subr.mxu0 %v2824_v0  ;;  %2529 = vmatpush3.msra.mxu1 %v1753_v37 }
 0x436   : > { %2492 = vmatpush3.msra.mxu0 %v2289_v30  ;;  %2530 = vmatprep.subr.mxu1 %v2824_v0  ;;  %v1836_v12 = vpop.permute.xlu0 %1835 }
 0x437   : > { %2493 = vmatprep.subr.mxu0 %v2824_v0  ;;  %2531 = vmatpush3.msra.mxu1 %v1752_v39 }
 0x438   : > { %2494 = vmatpush3.msra.mxu0 %v2288_v31  ;;  %2532 = vmatprep.subr.mxu1 %v2824_v0 }
 0x439   : > { %2496 = vmatmul.mubr.msk.f32.vlgmr.msra.gmra.mxu0 %vm1020_vm6, %v1507_v22  ;;  %2509 = vmatprep.subr.mxu0 %v2824_v0  ;;  %v1856_v22 = vld [vmem:[%s3430_s13 + $0x8] sm:$0xff] }
 0x43a   : > { %2525 = vmatprep.mubr.msk.f32.mxu0 %vm2825_vm0, %v2824_v0  ;;  %2510 = vmatpush3.msra.mxu0 %v1672_v32 }
 0x43b   : > { %2511 = vmatprep.subr.mxu0 %v2824_v0  ;;  %2533 = vmatpush3.msra.mxu1 %v1751_v42 }
 0x43c   : > { %2512 = vmatpush3.msra.mxu0 %v1671_v33  ;;  %2534 = vmatprep.subr.mxu1 %v2824_v0 }
 0x43d   : > { %2513 = vmatprep.subr.mxu0 %v2824_v0  ;;  %2535 = vmatpush3.msra.mxu1 %v1750_v45 }
 0x43e   : > { %2514 = vmatpush3.msra.mxu0 %v1670_v34  ;;  %2537 = vmatmul.mubr.msk.f32.vlgmr.msra.gmra.mxu1 %vm1020_vm6, %v1748_v46 }
 0x43f   : > { %2515 = vmatprep.subr.mxu0 %v2824_v0  ;;  %2539 = vmatprep.subr.mxu1 %v2824_v0 }
 0x440   : > { %2516 = vmatpush3.msra.mxu0 %v1669_v35  ;;  %2541 = vmatprep.mubr.msk.f32.mxu1 %vm2825_vm0, %v2824_v0 }
 0x441   : > { %2517 = vmatprep.subr.mxu0 %v2824_v0  ;;  %2540 = vmatpush3.msk.msra.mxu1 %vm1865_vm8, %v1860_v17 }
 0x442   : > { %2518 = vmatpush3.msra.mxu0 %v1668_v36  ;;  %2542 = vmatmul.mubr.msk.f32.vlgmr.msra.gmra.mxu1 %vm1861_vm9, %v1859_v19 }
 0x443   : > { %2519 = vmatprep.subr.mxu0 %v2824_v0  ;;  %2544 = vmatprep.subr.mxu1 %v2824_v0 }
 0x444   : > { %2520 = vmatpush3.msra.mxu0 %v1667_v38  ;;  %2545 = vmatpush3.msra.mxu1 %v1858_v18 }
 0x445   : > { %2521 = vmatprep.subr.mxu0 %v2824_v0  ;;  %2552 = vmatprep.mubr.msk.f32.mxu1 %vm2825_vm0, %v2824_v0 }
 0x446   : > { %2522 = vmatpush3.msra.mxu0 %v1666_v41  ;;  %2546 = vmatprep.subr.mxu1 %v2824_v0 }
 0x447   : > { %2523 = vmatprep.subr.mxu0 %v2824_v0  ;;  %2547 = vmatpush3.msra.mxu1 %v1857_v20 }
 0x448   : > { %2524 = vmatpush3.msra.mxu0 %v1665_v44  ;;  %2548 = vmatprep.subr.mxu1 %v2824_v0 }
 0x449   : > { %2549 = vmatpush3.msra.mxu1 %v1856_v22 }
 0x44a   : > { %2550 = vmatprep.subr.mxu1 %v2824_v0 }
 0x44b   : > { %2551 = vmatpush3.msra.mxu1 %v1855_v23 }
 0x47e   : > { %v1498_v40 = vpop.f32.mrf.mxu1 }
 0x480   : > { %v2486_v43 = vpop.f32.mrf.mxu1 }
 0x4f1   : > { %v1426_v48 = vpop.f32.mrf.mxu0 }
 0x4f2   : > { %v1499_v52 = vadd.f32 %v1498_v40, %v1426_v48 }
 0x4f3   : > { %v2475_v49 = vpop.f32.mrf.mxu0  ;;  %v1656_v50 = vpop.f32.mrf.mxu1 }
 0x4f5   : > { %v2508_v51 = vpop.f32.mrf.mxu1 }
 0x4f9   : > { %v1576_v53 = vpop.f32.mrf.mxu0 }
 0x4fa   : > { %v1580_v54 = vadd.f32 %v1576_v53, %v1499_v52 }
 0x4fb   : > { %v2497_v56 = vpop.f32.mrf.mxu0 }
 0x4fc   : > { %v1660_v57 = vadd.f32 %v1656_v50, %v1580_v54 }
 0x4fe   : > { %v1662_v58 = vadd.f32 %v1661_v55, %v1660_v57  ;;  %v1823_v60 = vpop.f32.mrf.mxu1 }
 0x500   : > { %v1663_v59 = vmax.f32 %v1662_v58, 0.0  ;;  %v2538_v61 = vpop.f32.mrf.mxu1 }
 0x502   : > { %2526 = vmatmul.mubr.msk.f32.vlgmr.msra.gmra.mxu0 %vm1673_vm7, %v1663_v59  ;;  %v3326_v0 = vpop.f32.mrf.mxu1 }
 0x504   : > { %v2543_v31 = vpop.f32.mrf.mxu1 }
 0x5c2   : > { %v1743_v63 = vpop.f32.mrf.mxu0 }
 0x5c3   : > { %v1747_v1 = vadd.f32 %v1743_v63, %v1664_v62 }
 0x5c4   : > { %v2527_v2 = vpop.f32.mrf.mxu0 }
 0x5c5   : > { %v1827_v3 = vadd.f32 %v1823_v60, %v1747_v1 }
 0x5c7   : > { %2634 = vtanh.f32 %v1827_v3  ;;  %v1828_v5 = vsub.f32 0.0, %v1827_v3 }
 0x5c9   : > { %v1829_v6 = vmul.f32 1.442695, %v1828_v5 }
 0x5cb   : > { %2636 = vpow2.f32 %v1829_v6 }
 0x5d4   : > { %v2635_v4 = vpop.eup %2634 }
 0x5d5   : > { %1840 = vrot.lane.b32.xlu1 %v2635_v4, %s2829_s10 }
 0x5d8   : > { %v2637_v7 = vpop.eup %2636 }
 0x5d9   : > { %v1831_v8 = vadd.f32 1.0, %v2637_v7 }
 0x5db   : > { %2638 = vrcp.f32 %v1831_v8 }
 0x5e8   : > { %v2639_v9 = vpop.eup %2638 }
 0x5e9   : > { %v1838_v13 = vmul.f32 %v2639_v9, %v1836_v12 }
 0x647   : > { %v1841_v10 = vpop.permute.xlu1 %1840 }
 0x648   : > { %v1843_v11 = vmul.f32 %v2639_v9, %v1841_v10 }
 0x64a   : > { %1845 = vrot.lane.b32.xlu1 %v1843_v11, %s2829_s10 }
 0x6bc   : > { %v1846_v14 = vpop.permute.xlu1 %1845 }
 0x6bd   : > { %v1848_v15 = vadd.f32 %v1846_v14, %v1838_v13 }
 0x6bf   : > { %2640 = vtanh.f32 %v1848_v15  ;;  %v2029_v26 = vrot.slane %v1848_v15, %v1942_v24 }
 0x6cc   : > { %v2641_v25 = vpop.eup %2640 }
 0x6cd   : > { %1851 = vrot.lane.b32.xlu0 %v2641_v25, %s2829_s10  ;;  %s2038_s10 = sand.u32 1, %s2950_s0  }
 0x6ce   : > { %s3340_s1 = scalar_lea.sflag [#allocation9], %s2038_s10 }
 0x6d1   : > { %2030 = vrot.lane.b32.xlu0 %v2029_v26, %s2828_s19  ;;  %s638_s19 = scalar_lea.vmem [#allocation8], %s3323_s29 }
 0x6d2   : > { %s2068_s27 = sshll.u32 %s638_s19, 4  ;;  %s2069_s27 = int_to_ptr.vmem [resolvable:$true] %s2068_s27 }
 0x6d3   : > { %s2694_s22 = scalar_lea.vmem %s2069_s27, 16 }
 0x6d4   : > { %p2695_p10 = scmp.ne.s32.totalorder %s2069_s27, %s2694_s22 }
 0x6d6   : > { %p2696_p12 = pnand %p2695_p10, %p2969_p5 }
 0x6d8   : > { %p2697_p8 = pneg %p2696_p12 }
 0x73f   : > { %v1852_v27 = vpop.permute.xlu0 %1851 }
 0x740   : > { %v1854_v28 = vmul.f32 %v2639_v9, %v1852_v27 }
 0x742   : > { %v1943_v29 = vrot.slane %v1854_v28, %v1942_v24 }
 0x743   : > { %v2031_v30 = vpop.permute.xlu0 %2030 }
 0x744   : > { %2033 = vst.msk [vmem:[%s644_s23] sm:$0x1] %vm2023_vm10, %v2031_v30  ;;  %1944 = vrot.lane.b32.xlu1 %v1943_v29, %s2830_s24  ;;  %s2831_s24 = smov [#allocation8]  }
 0x745   : > { %s2698_s3 = sshll.u32 %s2831_s24, 4  ;;  %s2699_s3 = int_to_ptr.vmem [resolvable:$false] %s2698_s3 }
 0x746   : > { %s2700_s0 = scalar_lea.vmem %s2699_s3, 32  ;;  %p2701_p11 = scmp.lt.s32.totalorder %s2069_s27, %s2699_s3 }
 0x747   : > { %p2702_p0 = scmp.lt.s32.totalorder %s2700_s0, %s2694_s22 }
 0x749   : > { %p2703_p1 = por %p2702_p0, %p2701_p11 }
 0x74b   : > { %p2704_p3 = pnand %p2703_p1, %p2697_p8 }
 0x7b6   : > { %v1945_v32 = vpop.permute.xlu1 %1944 }
 0x7b7   : > { %2024 = vst.msk [vmem:[%s638_s19] sm:$0x1] %vm2023_vm10, %v1945_v32  ;;  %2553 = vmatmul.mubr.msk.f32.vlgmr.msra.gmra.mxu1 %vm1020_vm6, %v1945_v32 }
 0x7b8   : > { %2707 = shalt.err (!%p2704_p3)
}
 0x7b9   : > { %s2708_s23 = scalar_lea.hbm %s3338_s25, 16  ;;  %s2712_s11 = scalar_lea.hbm %s3434_s17, 32 }
 0x7ba   : > { %p2709_p2 = scmp.ne.s32.totalorder %s3338_s25, %s2708_s23  ;;  %p2713_p7 = scmp.lt.s32.totalorder %s3338_s25, %s3434_s17 }
 0x7bb   : > { %p2714_p6 = scmp.lt.s32.totalorder %s2712_s11, %s2708_s23 }
 0x7bc   : > { %p2710_p4 = pnand %p2709_p2, %p2969_p5 }
 0x7bd   : > { %p2715_p9 = por %p2714_p6, %p2713_p7 }
 0x7be   : > { %p2711_p13 = pneg %p2710_p4 }
 0x7c0   : > { %p2716_p10 = pnand %p2715_p9, %p2711_p13 }
 0x7c2   : > { %2719 = shalt.err (!%p2716_p10)
}
 0x7c3   : > { %2564 = dma.vmem_to_hbm [thread:$0]  (%p2969_p5), %s2069_s27, 16, %s3338_s25, %s3340_s1  }
 0x7c4   : > { %s2079_s0 = scalar_lea.hbm %s3435_s18, %s3332_s26  ;;  %s2720_s19 = scalar_lea.vmem %s2082_s21, 16 }
 0x7c5   : > { %p2721_p12 = scmp.ne.s32.totalorder %s2082_s21, %s2720_s19  ;;  %s2832_s23 = smov [#allocation10]  }
 0x7c6   : > { %s2724_s10 = sshll.u32 %s2832_s23, 4  ;;  %s2725_s10 = int_to_ptr.vmem [resolvable:$false] %s2724_s10 }
 0x7c7   : > { %p2722_p8 = pnand %p2721_p12, %p2969_p5  ;;  %s2726_s11 = scalar_lea.vmem %s2725_s10, 32 }
 0x7c8   : > { %p2727_p0 = scmp.lt.s32.totalorder %s2082_s21, %s2725_s10  ;;  %p2728_p1 = scmp.lt.s32.totalorder %s2726_s11, %s2720_s19 }
 0x7c9   : > { %p2723_p11 = pneg %p2722_p8 }
 0x7ca   : > { %p2729_p3 = por %p2728_p1, %p2727_p0 }
 0x7cc   : > { %p2730_p2 = pnand %p2729_p3, %p2723_p11 }
 0x7ce   : > { %2733 = shalt.err (!%p2730_p2)
}
 0x7cf   : > { %s2734_s25 = scalar_lea.hbm %s2079_s0, 16  ;;  %s2738_s24 = scalar_lea.hbm %s3435_s18, 32 }
 0x7d0   : > { %p2735_p4 = scmp.ne.s32.totalorder %s2079_s0, %s2734_s25  ;;  %p2739_p6 = scmp.lt.s32.totalorder %s2079_s0, %s3435_s18 }
 0x7d1   : > { %p2740_p9 = scmp.lt.s32.totalorder %s2738_s24, %s2734_s25 }
 0x7d2   : > { %p2736_p13 = pnand %p2735_p4, %p2969_p5 }
 0x7d3   : > { %p2741_p10 = por %p2740_p9, %p2739_p6 }
 0x7d4   : > { %p2737_p7 = pneg %p2736_p13 }
 0x7d6   : > { %p2742_p12 = pnand %p2741_p10, %p2737_p7 }
 0x7d8   : > { %2745 = shalt.err (!%p2742_p12)
}
 0x7d9   : > { %2565 = dma.vmem_to_hbm [thread:$0]  (%p2969_p5), %s2082_s21, 16, %s2079_s0, %s3340_s1   ;;  %v2018_v34 = vld [vmem:[%s3432_s15] sm:$0x1]  ;;  %vm2020_vm11 = vcmask 32768  }
 0x7da   : > { %s632_s10 = scalar_lea.vmem [#allocation7], %s3323_s29  ;;  %s2053_s20 = scalar_lea.hbm %s3433_s16, %s3332_s26 }
 0x7db   : > { %s2055_s11 = sshll.u32 %s632_s10, 4  ;;  %s2035_s24 = scalar_lea.sflag [#allocation4], %s3323_s29  ;;  %s2056_s11 = int_to_ptr.vmem [resolvable:$true] %s2055_s11 }
 0x7dc   : > { %s2746_s21 = scalar_lea.vmem %s2056_s11, 16  ;;  %s2833_s1 = smov [#allocation7]  }
 0x7dd   : > { %p2747_p8 = scmp.ne.s32.totalorder %s2056_s11, %s2746_s21  ;;  %s2750_s0 = sshll.u32 %s2833_s1, 4  ;;  %s2751_s0 = int_to_ptr.vmem [resolvable:$false] %s2750_s0 }
 0x7de   : > { %s2752_s3 = scalar_lea.vmem %s2751_s0, 32  ;;  %p2753_p1 = scmp.lt.s32.totalorder %s2056_s11, %s2751_s0 }
 0x7df   : > { %p2748_p11 = pnand %p2747_p8, %p2969_p5  ;;  %p2754_p3 = scmp.lt.s32.totalorder %s2752_s3, %s2746_s21 }
 0x7e1   : > { %p2749_p0 = pneg %p2748_p11  ;;  %p2755_p2 = por %p2754_p3, %p2753_p1 }
 0x7e3   : > { %p2756_p4 = pnand %p2755_p2, %p2749_p0 }
 0x877   : > { %v2014_v33 = vpop.f32.mrf.mxu1 }
 0x878   : > { %v2015_v35 = vadd.f32 %v2014_v33, %v3326_v0 }
 0x879   : > { %v2554_v36 = vpop.f32.mrf.mxu1 }
 0x87a   : > { %v2019_v37 = vadd.f32 %v2018_v34, %v2015_v35 }
 0x87c   : > { %2021 = vst.msk [vmem:[%s632_s10] sm:$0x1] %vm2020_vm11, %v2019_v37 }
 0x87d   : > { %2759 = shalt.err (!%p2756_p4)
}
 0x87e   : > { %s2760_s22 = scalar_lea.hbm %s2053_s20, 16  ;;  %s2764_s19 = scalar_lea.hbm %s3433_s16, 32 }
 0x87f   : > { %p2761_p13 = scmp.ne.s32.totalorder %s2053_s20, %s2760_s22  ;;  %p2765_p9 = scmp.lt.s32.totalorder %s2053_s20, %s3433_s16 }
 0x880   : > { %p2766_p10 = scmp.lt.s32.totalorder %s2764_s19, %s2760_s22 }
 0x881   : > { %p2762_p7 = pnand %p2761_p13, %p2969_p5 }
 0x882   : > { %p2767_p12 = por %p2766_p10, %p2765_p9 }
 0x883   : > { %p2763_p6 = pneg %p2762_p7 }
 0x885   : > { %p2768_p8 = pnand %p2767_p12, %p2763_p6 }
 0x887   : > { %2771 = shalt.err (!%p2768_p8)
}
 0x888   : > { %2563 = dma.vmem_to_hbm [thread:$0]  (%p2969_p5), %s2056_s11, 16, %s2053_s20, %s2035_s24  }
 0x889 PF: > { %s3468_s25 = sld [smem:[#allocation15_spill]]  ;;  %p2590_p11 = scmp.ge.s32.totalorder %s2818_s30, 2 }
 0x88a   : > { %s3469_s27 = sld [smem:[#allocation19_spill]] }
 0x88f   : > { %s2093_s21 = sand.u32 1, %s3468_s25  }
 0x890   : > { %p3470_p0 = scmp.ne.s32.totalorder %s3469_s27, 0  ;;  %s2094_s1 = scalar_lea.sflag [#allocation4], %s2093_s21 }
 0x892   : > { %p2577_p1 = pnand %p2590_p11, %p3470_p0 }
 0x894   : > { %p2578_p3 = pneg %p2577_p1 }
 0x896   : > { %2797 = dma.done.wait (%p2578_p3), %s2094_s1, 16  }
 0x897   : > { %2799 = vsyncadd (%p2578_p3), %s2094_s1, 4294967280  ;;  %s3471_s0 = sadd.s32 4294967294, %s2818_s30  }
 0x898   : > { %s2101_s3 = sand.u32 1, %s3471_s0  }
 0x899   : > { %s2102_s22 = scalar_lea.sflag [#allocation9], %s2101_s3 }
 0x89a   : > { %2801 = dma.done.wait (%p2578_p3), %s2102_s22, 32  }
 0x89b   : > { %2803 = vsyncadd (%p2578_p3), %s2102_s22, 4294967264  ;;  %s3472_s30 = sld [smem:[#allocation17_spill]]  ;;  %s3475_s27 = smov %s2810_s28 }
 0x89c   : > { %s3473_s2 = sld [smem:[#allocation16_spill]] }
 0x89d   : > { %s3474_s29 = sld [smem:[#allocation18_spill]] }
 0x8a1   : > { %p34_p5 = scmp.ge.s32.totalorder %s3472_s30, 4  }
 0x8a2   : > { %s3476_s28 = smov %s3473_s2 }
 0x8a3   :  { %36 = sbr.rel (!%p34_p5) target bundleno = 14 (0xe), region = 178 }
 0x8a8   :  { %2114 = vsyncpa [#allocation3], 1 }
 0x8a9   :  { %2116 = vsyncpa [#allocation3 + $0x1], 1 }
 0x8aa   :  { %2117 = vsyncpa [#allocation6], 1 }
 0x8ab   :  { %2118 = vsyncpa [#allocation4], 1 }
 0x8ac   :  { %2120 = vsyncpa [#allocation4 + $0x1], 1 }
 0x8ad   :  { %2121 = vsyncpa [#allocation9], 1 }
 0x8ae   :  { %2123 = vsyncpa [#allocation9 + $0x1], 1 }

</bundles_post_ra>
